<compile_context>
chip_gen: v6e
topology: v6e:2x2x1
jax: 0.10.0
libtpu: 0.0.40
codegen_flags: <defaults>
</compile_context>

<pallas_src>
import functools
import math

import jax
import jax.numpy as jnp
import numpy as np
from jax import lax
from jax.experimental import pallas as pl
from jax.experimental.pallas import tpu as pltpu

_LN_EPS = 1e-5
_PAD = 8  # sublane-aligned left pad / conv carry rows (>= d_conv - 1)


def _round_up(v, m):
    return (v + m - 1) // m * m


def _mamba_encoder_kernel(
    # inputs
    x_ref,        # (1, LT, Dp) f32
    w_in_ref,     # (Dp, 2*Ip)  bf16   fused in_proj [xs | z], transposed
    conv_w_ref,   # (d_conv, Ip) f32   depthwise conv weight, transposed
    conv_b_ref,   # (1, Ip) f32
    w_xp_ref,     # (Ip, 384)   bf16   fused x_proj [dt|B|C], 128-lane segments
    w_dt_ref,     # (128, Ip)   bf16   dt_proj weight, K padded to 128
    b_dt_ref,     # (1, Ip) f32
    a_t_ref,      # (S, Ip) f32        A^T, A = -exp(A_log), zero in padded lanes
    d_param_ref,  # (1, Ip) f32
    w_out_ref,    # (Ip, Dp)    bf16
    ln_g_ref,     # (1, Dp) f32
    ln_b_ref,     # (1, Dp) f32
    # output
    out_ref,      # (1, LT, Dp) f32
    # scratch (persistent across grid iterations)
    xpad_s,       # (LT + 8, Ip) f32   conv input with carried left context
    carry_s,      # (8, Ip) f32        last rows of previous tile's xs
    h_s,          # (S, Ip) f32        scan state carried across L tiles
    xconv_s,      # (LT, Ip) f32
    dt_s,         # (LT, Ip) f32
    bc_s,         # (LT, 256) f32      lane-dense [B | C] segments
    z_s,          # (LT, Ip) f32       gate branch
    y_s,          # (LT, Ip) f32       gated scan output
    *, cs, d_conv, d_state, d_real,
):
    LT = xconv_s.shape[0]
    Ip = xconv_s.shape[1]
    Dp = out_ref.shape[2]
    n_chunks = LT // cs
    l = pl.program_id(1)

    # New sequence (new batch row on this core): reset carried state.
    @pl.when(l == 0)
    def _():
        carry_s[...] = jnp.zeros_like(carry_s)
        h_s[...] = jnp.zeros_like(h_s)

    # ---- fused in_proj: one bf16 MXU matmul for both xs and the gate z ----
    x_bf = x_ref[0].astype(jnp.bfloat16)
    xz = jnp.dot(x_bf, w_in_ref[...], preferred_element_type=jnp.float32)
    xs = xz[:, :Ip]                       # lane-aligned slices (Ip % 128 == 0)
    z_s[...] = xz[:, Ip:]

    # ---- causal depthwise conv1d with left context carried across tiles ----
    xpad_s[pl.ds(0, _PAD), :] = carry_s[...]
    xpad_s[pl.ds(_PAD, LT), :] = xs
    carry_s[...] = xpad_s[pl.ds(LT, _PAD), :]      # save tail for next tile
    k0 = _PAD - (d_conv - 1)
    x_conv = xpad_s[pl.ds(k0, LT), :] * conv_w_ref[0:1, :]
    for k in range(1, d_conv):
        x_conv = x_conv + xpad_s[pl.ds(k0 + k, LT), :] * conv_w_ref[k:k + 1, :]
    x_conv = x_conv + conv_b_ref[...]
    x_conv = x_conv * jax.nn.sigmoid(x_conv)       # SiLU
    xconv_s[...] = x_conv

    # ---- fused x_proj (dt | B | C), 128-lane-aligned segments; dt_proj ----
    xp = jnp.dot(x_conv.astype(jnp.bfloat16), w_xp_ref[...],
                 preferred_element_type=jnp.float32)            # (LT, 384)
    bc_s[...] = xp[:, 128:384]                                   # full-width store
    dt = jnp.dot(xp[:, 0:128].astype(jnp.bfloat16), w_dt_ref[...],
                 preferred_element_type=jnp.float32)
    dt_s[...] = jax.nn.softplus(dt + b_dt_ref[...])

    # ---- selective scan, chunked; only the FMA recurrence is serial ----
    a_t = a_t_ref[...]                              # (S, Ip)
    d_param = d_param_ref[...]                      # (1, Ip)

    def chunk_body(c, h):
        base = pl.multiple_of(c * cs, cs)
        dt_c = dt_s[pl.ds(base, cs), :]             # (cs, Ip)
        x_c = xconv_s[pl.ds(base, cs), :]           # (cs, Ip)
        z_c = z_s[pl.ds(base, cs), :]               # (cs, Ip)
        b_c = bc_s[pl.ds(base, cs), pl.ds(0, d_state)]      # (cs, S)
        c_c = bc_s[pl.ds(base, cs), pl.ds(128, d_state)]    # (cs, S)
        # Vectorized per-chunk tensors (off the recurrence critical path).
        dA = jnp.exp(dt_c[:, None, :] * a_t[None, :, :])        # (cs, S, Ip)
        dBu = (dt_c * x_c)[:, None, :] * b_c[:, :, None]        # (cs, S, Ip)
        hs = []
        for t in range(cs):                          # serial FMA only
            h = dA[t] * h + dBu[t]
            hs.append(h)
        hs = jnp.stack(hs, axis=0)                   # (cs, S, Ip)
        # Batched C contraction over the whole chunk (VPU mul + XLU reduce).
        y_c = jnp.sum(c_c[:, :, None] * hs, axis=1) + d_param * x_c
        y_s[pl.ds(base, cs), :] = y_c * (z_c * jax.nn.sigmoid(z_c))  # fused gate
        return h

    h_fin = lax.fori_loop(0, n_chunks, chunk_body, h_s[...])
    h_s[...] = h_fin                                 # carry across L tiles

    # ---- out_proj + LayerNorm (real D cols only) + SiLU + residual ----
    out_m = jnp.dot(y_s[...].astype(jnp.bfloat16), w_out_ref[...],
                    preferred_element_type=jnp.float32)          # (LT, Dp)
    col = lax.broadcasted_iota(jnp.int32, (1, Dp), 1)
    mask = (col < d_real).astype(jnp.float32)
    inv_d = 1.0 / float(d_real)
    mean = jnp.sum(out_m, axis=-1, keepdims=True) * inv_d        # padded cols are 0
    cent = (out_m - mean) * mask
    var = jnp.sum(cent * cent, axis=-1, keepdims=True) * inv_d
    ln = cent * lax.rsqrt(var + _LN_EPS) * ln_g_ref[...] + ln_b_ref[...]
    out_ref[0] = x_ref[0] + ln * jax.nn.sigmoid(ln)


def mamba_encoder_pallas(x, p, *, l_tile=128, chunk=16):
    """x: (B, L, D) f32; p: prepared (fused / transposed / lane-padded) params."""
    B, L, D = x.shape
    Dp = p["ln_g"].shape[1]
    Ip = p["A_T"].shape[1]
    S = p["A_T"].shape[0]
    d_conv = p["conv_w_T"].shape[0]
    assert d_conv - 1 <= _PAD

    # Scan chunk (multiple of 8) and L tile (multiple of the chunk).
    cs = min(_round_up(chunk, 8), _round_up(L, 8))
    LT = min(_round_up(l_tile, cs), _round_up(_round_up(L, 8), cs))
    L_pad = _round_up(L, LT)

    x_pad = jnp.pad(x, ((0, 0), (0, L_pad - L), (0, Dp - D)))

    weight_names = [
        "w_in_fused", "conv_w_T", "conv_b", "w_xp_fused", "w_dt_T", "b_dt",
        "A_T", "D", "w_out_T", "ln_g", "ln_b",
    ]
    weights = [p[k] for k in weight_names]

    def full_spec(arr):
        nd = arr.ndim
        return pl.BlockSpec(arr.shape, lambda b, l, nd=nd: (0,) * nd)

    grid_spec = pltpu.PrefetchScalarGridSpec(
        num_scalar_prefetch=0,
        grid=(B, L_pad // LT),
        in_specs=[pl.BlockSpec((1, LT, Dp), lambda b, l: (b, l, 0))]
                 + [full_spec(w) for w in weights],
        out_specs=pl.BlockSpec((1, LT, Dp), lambda b, l: (b, l, 0)),
        scratch_shapes=[
            pltpu.VMEM((LT + _PAD, Ip), jnp.float32),   # padded conv input
            pltpu.VMEM((_PAD, Ip), jnp.float32),        # conv carry
            pltpu.VMEM((S, Ip), jnp.float32),           # scan state h
            pltpu.VMEM((LT, Ip), jnp.float32),          # x_conv
            pltpu.VMEM((LT, Ip), jnp.float32),          # dt
            pltpu.VMEM((LT, 256), jnp.float32),         # [B | C] lane-dense
            pltpu.VMEM((LT, Ip), jnp.float32),          # z (gate)
            pltpu.VMEM((LT, Ip), jnp.float32),          # gated y
        ],
    )

    # Sized VMEM limit (never request full physical VMEM on v7x).
    scratch_bytes = 4 * ((LT + _PAD) * Ip + _PAD * Ip + S * Ip
                         + 4 * LT * Ip + LT * 256)
    io_bytes = 2 * 2 * LT * Dp * 4
    w_bytes = sum(int(np.prod(w.shape)) * w.dtype.itemsize for w in weights)
    vmem_limit = int(min(max(2 * (scratch_bytes + io_bytes + w_bytes),
                             32 << 20), 48 << 20))

    kernel = functools.partial(_mamba_encoder_kernel, cs=cs, d_conv=d_conv,
                               d_state=S, d_real=D)
    out = pl.pallas_call(
        kernel,
        out_shape=jax.ShapeDtypeStruct((B, L_pad, Dp), jnp.float32),
        grid_spec=grid_spec,
        compiler_params=pltpu.CompilerParams(
            dimension_semantics=("parallel", "arbitrary"),
            vmem_limit_bytes=vmem_limit),
    )(x_pad, *weights)
    return out[:, :L, :D]


def init_params(key, dim, d_state=16, d_conv=4, expand=2):
    """Raw parameters in PyTorch layout."""
    d_inner = expand * dim
    dt_rank = math.ceil(dim / 16)
    ks = jax.random.split(key, 8)
    s = 0.1
    return dict(
        in_proj_w=jax.random.normal(ks[0], (2 * d_inner, dim), jnp.float32) * s,
        conv_w=jax.random.normal(ks[1], (d_inner, d_conv), jnp.float32) * s,
        conv_b=jax.random.normal(ks[2], (d_inner,), jnp.float32) * s,
        x_proj_w=jax.random.normal(ks[3], (dt_rank + 2 * d_state, d_inner),
                                   jnp.float32) * s,
        dt_proj_w=jax.random.normal(ks[4], (d_inner, dt_rank), jnp.float32) * s,
        dt_proj_b=jax.random.normal(ks[5], (d_inner,), jnp.float32) * s,
        A_log=jnp.log(jnp.tile(jnp.arange(1, d_state + 1, dtype=jnp.float32),
                               (d_inner, 1))),
        D=jnp.ones((d_inner,), jnp.float32),
        out_proj_w=jax.random.normal(ks[6], (dim, d_inner), jnp.float32) * s,
        ln_g=jnp.ones((dim,), jnp.float32),
        ln_b=jnp.zeros((dim,), jnp.float32),
    )


def prepare_params(raw, dim, d_state=16, d_conv=4, expand=2):
    """Fuse / transpose / zero-pad weights to lane-dense (multiple-of-128) shapes."""
    d_inner = expand * dim
    dt_rank = math.ceil(dim / 16)
    assert dt_rank <= 128 and d_state <= 128
    Dp = _round_up(dim, 128)
    Ip = _round_up(d_inner, 128)

    w_in = raw["in_proj_w"]
    w_in_f = jnp.zeros((Dp, 2 * Ip), jnp.float32)
    w_in_f = w_in_f.at[:dim, :d_inner].set(w_in[:d_inner].T)
    w_in_f = w_in_f.at[:dim, Ip:Ip + d_inner].set(w_in[d_inner:].T)

    conv_w_T = jnp.zeros((d_conv, Ip), jnp.float32).at[:, :d_inner].set(raw["conv_w"].T)
    conv_b = jnp.zeros((1, Ip), jnp.float32).at[0, :d_inner].set(raw["conv_b"])

    xp = raw["x_proj_w"]
    w_xp_f = jnp.zeros((Ip, 3 * 128), jnp.float32)
    w_xp_f = w_xp_f.at[:d_inner, :dt_rank].set(xp[:dt_rank].T)
    w_xp_f = w_xp_f.at[:d_inner, 128:128 + d_state].set(xp[dt_rank:dt_rank + d_state].T)
    w_xp_f = w_xp_f.at[:d_inner, 256:256 + d_state].set(xp[dt_rank + d_state:].T)

    w_dt = jnp.zeros((128, Ip), jnp.float32).at[:dt_rank, :d_inner].set(raw["dt_proj_w"].T)
    b_dt = jnp.zeros((1, Ip), jnp.float32).at[0, :d_inner].set(raw["dt_proj_b"])

    a_mat = -jnp.exp(raw["A_log"])                      # (d_inner, d_state)
    A_T = jnp.zeros((d_state, Ip), jnp.float32).at[:, :d_inner].set(a_mat.T)
    d_par = jnp.zeros((1, Ip), jnp.float32).at[0, :d_inner].set(raw["D"])

    w_out_T = jnp.zeros((Ip, Dp), jnp.float32).at[:d_inner, :dim].set(raw["out_proj_w"].T)
    ln_g = jnp.zeros((1, Dp), jnp.float32).at[0, :dim].set(raw["ln_g"])
    ln_b = jnp.zeros((1, Dp), jnp.float32).at[0, :dim].set(raw["ln_b"])

    return dict(
        w_in_fused=w_in_f.astype(jnp.bfloat16),
        conv_w_T=conv_w_T,
        conv_b=conv_b,
        w_xp_fused=w_xp_f.astype(jnp.bfloat16),
        w_dt_T=w_dt.astype(jnp.bfloat16),
        b_dt=b_dt,
        A_T=A_T,
        D=d_par,
        w_out_T=w_out_T.astype(jnp.bfloat16),
        ln_g=ln_g,
        ln_b=ln_b,
    )


def ref_mamba_encoder(x, raw, *, d_state, d_conv, dt_rank):
    """Pure-JAX reference (raw PyTorch-layout params, same bf16 matmul precision)."""
    w_in = raw["in_proj_w"]
    conv_w = raw["conv_w"]
    conv_b = raw["conv_b"]
    x_proj_w = raw["x_proj_w"]
    dt_w = raw["dt_proj_w"]
    dt_b = raw["dt_proj_b"]
    A = -jnp.exp(raw["A_log"])                           # (I, S)
    Dpar = raw["D"]
    w_out = raw["out_proj_w"]
    g, b = raw["ln_g"], raw["ln_b"]
    d_inner = conv_w.shape[0]

    def mm(a, w):                                        # a @ w.T, bf16 in / f32 acc
        return jnp.dot(a.astype(jnp.bfloat16), w.T.astype(jnp.bfloat16),
                       preferred_element_type=jnp.float32)

    def one(xb):                                         # (L, D)
        L = xb.shape[0]
        xz = mm(xb, w_in)
        xs, z = xz[:, :d_inner], xz[:, d_inner:]
        xs_pad = jnp.concatenate(
            [jnp.zeros((d_conv - 1, d_inner), jnp.float32), xs], axis=0)
        xc = jnp.stack([(xs_pad[t:t + d_conv] * conv_w.T).sum(0) for t in range(L)], 0)
        xc = jax.nn.silu(xc + conv_b)
        xp = mm(xc, x_proj_w)
        dt_low = xp[:, :dt_rank]
        B_ = xp[:, dt_rank:dt_rank + d_state]
        C_ = xp[:, dt_rank + d_state:]
        dt = jax.nn.softplus(mm(dt_low, dt_w) + dt_b)

        def step(h, t):
            dA = jnp.exp(dt[t][:, None] * A)                     # (I, S)
            dBu = (dt[t] * xc[t])[:, None] * B_[t][None, :]      # (I, S)
            h = dA * h + dBu
            y = h @ C_[t] + Dpar * xc[t]
            return h, y

        _, ys = lax.scan(step, jnp.zeros((d_inner, d_state), jnp.float32),
                         jnp.arange(L))
        y = ys * jax.nn.silu(z)
        om = mm(y, w_out)
        mu = om.mean(-1, keepdims=True)
        var = ((om - mu) ** 2).mean(-1, keepdims=True)
        ln = (om - mu) / jnp.sqrt(var + _LN_EPS) * g + b
        return xb + jax.nn.silu(ln)

    return jax.vmap(one)(x)


if __name__ == "__main__":
    dim, d_state, d_conv, expand = 32, 16, 4, 2
    B, L = 2, 8
    key = jax.random.PRNGKey(0)
    kx, kp = jax.random.split(key)
    x = jax.random.normal(kx, (B, L, dim), jnp.float32)
    raw = init_params(kp, dim, d_state=d_state, d_conv=d_conv, expand=expand)
    params = prepare_params(raw, dim, d_state=d_state, d_conv=d_conv, expand=expand)

    out = mamba_encoder_pallas(x, params)
    out = jax.block_until_ready(out)

    ref = ref_mamba_encoder(x, raw, d_state=d_state, d_conv=d_conv,
                            dt_rank=math.ceil(dim / 16))
    np.testing.assert_allclose(np.asarray(out), np.asarray(ref),
                               rtol=2e-3, atol=2e-3)
    print("KERNEL_OK")
</pallas_src>

<mosaic_0001>
module attributes {stable_mosaic.version = 11 : i64} {
  func.func @_mamba_encoder_kernel(%arg0: i32, %arg1: i32, %arg2: memref<1x8x128xf32, #tpu.memory_space<vmem>>, %arg3: memref<128x256xbf16, #tpu.memory_space<vmem>>, %arg4: memref<4x128xf32, #tpu.memory_space<vmem>>, %arg5: memref<1x128xf32, #tpu.memory_space<vmem>>, %arg6: memref<128x384xbf16, #tpu.memory_space<vmem>>, %arg7: memref<128x128xbf16, #tpu.memory_space<vmem>>, %arg8: memref<1x128xf32, #tpu.memory_space<vmem>>, %arg9: memref<16x128xf32, #tpu.memory_space<vmem>>, %arg10: memref<1x128xf32, #tpu.memory_space<vmem>>, %arg11: memref<128x128xbf16, #tpu.memory_space<vmem>>, %arg12: memref<1x128xf32, #tpu.memory_space<vmem>>, %arg13: memref<1x128xf32, #tpu.memory_space<vmem>>, %arg14: memref<1x8x128xf32, #tpu.memory_space<vmem>>, %arg15: memref<16x128xf32, #tpu.memory_space<vmem>>, %arg16: memref<8x128xf32, #tpu.memory_space<vmem>>, %arg17: memref<16x128xf32, #tpu.memory_space<vmem>>, %arg18: memref<8x128xf32, #tpu.memory_space<vmem>>, %arg19: memref<8x128xf32, #tpu.memory_space<vmem>>, %arg20: memref<8x256xf32, #tpu.memory_space<vmem>>, %arg21: memref<8x128xf32, #tpu.memory_space<vmem>>, %arg22: memref<8x128xf32, #tpu.memory_space<vmem>>) attributes {dimension_semantics = [#tpu.dimension_semantics<parallel>, #tpu.dimension_semantics<arbitrary>], iteration_bounds = array<i64: 2, 1>, scalar_prefetch = 0 : i64, scratch_operands = 8 : i64, tpu.core_type = #tpu.core_type<tc>, window_params = [{transform_indices = @transform_0, window_bounds = array<i64: 1, 8, 128>}, {pipeline_mode = #tpu.pipeline_mode<synchronous>, transform_indices = @transform_1, window_bounds = array<i64: 128, 256>}, {pipeline_mode = #tpu.pipeline_mode<synchronous>, transform_indices = @transform_2, window_bounds = array<i64: 4, 128>}, {pipeline_mode = #tpu.pipeline_mode<synchronous>, transform_indices = @transform_3, window_bounds = array<i64: 1, 128>}, {pipeline_mode = #tpu.pipeline_mode<synchronous>, transform_indices = @transform_4, window_bounds = array<i64: 128, 384>}, {pipeline_mode = #tpu.pipeline_mode<synchronous>, transform_indices = @transform_5, window_bounds = array<i64: 128, 128>}, {pipeline_mode = #tpu.pipeline_mode<synchronous>, transform_indices = @transform_6, window_bounds = array<i64: 1, 128>}, {pipeline_mode = #tpu.pipeline_mode<synchronous>, transform_indices = @transform_7, window_bounds = array<i64: 16, 128>}, {pipeline_mode = #tpu.pipeline_mode<synchronous>, transform_indices = @transform_8, window_bounds = array<i64: 1, 128>}, {pipeline_mode = #tpu.pipeline_mode<synchronous>, transform_indices = @transform_9, window_bounds = array<i64: 128, 128>}, {pipeline_mode = #tpu.pipeline_mode<synchronous>, transform_indices = @transform_10, window_bounds = array<i64: 1, 128>}, {pipeline_mode = #tpu.pipeline_mode<synchronous>, transform_indices = @transform_11, window_bounds = array<i64: 1, 128>}, {transform_indices = @transform_12, window_bounds = array<i64: 1, 8, 128>}]} {
    %c0_i32 = arith.constant 0 : i32
    %0 = arith.cmpi eq, %arg1, %c0_i32 : i32
    %1 = arith.extui %0 : i1 to i32
    %c0_i32_0 = arith.constant 0 : i32
    %2 = arith.cmpi ne, %1, %c0_i32_0 : i32
    scf.if %2 {
      %cst_82 = arith.constant 0.000000e+00 : f32
      %218 = vector.broadcast %cst_82 : f32 to vector<8x128xf32>
      %c0_83 = arith.constant 0 : index
      %c0_84 = arith.constant 0 : index
      %219 = vector.load %arg16[%c0_83, %c0_84] : memref<8x128xf32, #tpu.memory_space<vmem>>, vector<8x128xf32>
      tpu.vector_store %arg16[%c0_83, %c0_84], %218 {strides = array<i32>} : memref<8x128xf32, #tpu.memory_space<vmem>>, vector<8x128xf32>,
      %cst_85 = arith.constant 0.000000e+00 : f32
      %220 = vector.broadcast %cst_85 : f32 to vector<16x128xf32>
      %c0_86 = arith.constant 0 : index
      %c0_87 = arith.constant 0 : index
      %221 = vector.load %arg17[%c0_86, %c0_87] : memref<16x128xf32, #tpu.memory_space<vmem>>, vector<16x128xf32>
      tpu.vector_store %arg17[%c0_86, %c0_87], %220 {strides = array<i32>} : memref<16x128xf32, #tpu.memory_space<vmem>>, vector<16x128xf32>,
    } else {
    }
    %c0 = arith.constant 0 : index
    %c0_1 = arith.constant 0 : index
    %c0_2 = arith.constant 0 : index
    %3 = vector.load %arg2[%c0, %c0_1, %c0_2] : memref<1x8x128xf32, #tpu.memory_space<vmem>>, vector<1x8x128xf32>
    %4 = vector.shape_cast %3 : vector<1x8x128xf32> to vector<8x128xf32>
    %5 = arith.truncf %4 : vector<8x128xf32> to vector<8x128xbf16>
    %c0_3 = arith.constant 0 : index
    %c0_4 = arith.constant 0 : index
    %6 = vector.load %arg3[%c0_3, %c0_4] : memref<128x256xbf16, #tpu.memory_space<vmem>>, vector<128x256xbf16>
    %cst = arith.constant dense<0.000000e+00> : vector<8x256xf32>
    %7 = tpu.matmul %5, %6, %cst {dimension_numbers = #tpu.dot_dimension_numbers<[1], [0], [0], [1], [0, 0, 1, 1], [], []>} : vector<8x128xbf16>, vector<128x256xbf16>, vector<8x256xf32> -> vector<8x256xf32>
    %8 = vector.extract_strided_slice %7 {offsets = [0, 0], sizes = [8, 128], strides = [1, 1]} : vector<8x256xf32> to vector<8x128xf32>
    %9 = vector.extract_strided_slice %7 {offsets = [0, 128], sizes = [8, 128], strides = [1, 1]} : vector<8x256xf32> to vector<8x128xf32>
    %c0_5 = arith.constant 0 : index
    %c0_6 = arith.constant 0 : index
    %10 = vector.load %arg21[%c0_5, %c0_6] : memref<8x128xf32, #tpu.memory_space<vmem>>, vector<8x128xf32>
    tpu.vector_store %arg21[%c0_5, %c0_6], %9 {strides = array<i32>} : memref<8x128xf32, #tpu.memory_space<vmem>>, vector<8x128xf32>,
    %c0_7 = arith.constant 0 : index
    %c0_8 = arith.constant 0 : index
    %11 = vector.load %arg16[%c0_7, %c0_8] : memref<8x128xf32, #tpu.memory_space<vmem>>, vector<8x128xf32>
    %c0_9 = arith.constant 0 : index
    %c0_10 = arith.constant 0 : index
    %12 = vector.load %arg15[%c0_9, %c0_10] : memref<16x128xf32, #tpu.memory_space<vmem>>, vector<8x128xf32>
    tpu.vector_store %arg15[%c0_9, %c0_10], %11 {strides = array<i32>} : memref<16x128xf32, #tpu.memory_space<vmem>>, vector<8x128xf32>,
    %c8 = arith.constant 8 : index
    %c0_11 = arith.constant 0 : index
    %13 = vector.load %arg15[%c8, %c0_11] : memref<16x128xf32, #tpu.memory_space<vmem>>, vector<8x128xf32>
    tpu.vector_store %arg15[%c8, %c0_11], %8 {strides = array<i32>} : memref<16x128xf32, #tpu.memory_space<vmem>>, vector<8x128xf32>,
    %c8_12 = arith.constant 8 : index
    %c0_13 = arith.constant 0 : index
    %14 = vector.load %arg15[%c8_12, %c0_13] : memref<16x128xf32, #tpu.memory_space<vmem>>, vector<8x128xf32>
    %c0_14 = arith.constant 0 : index
    %c0_15 = arith.constant 0 : index
    %15 = vector.load %arg16[%c0_14, %c0_15] : memref<8x128xf32, #tpu.memory_space<vmem>>, vector<8x128xf32>
    tpu.vector_store %arg16[%c0_14, %c0_15], %14 {strides = array<i32>} : memref<8x128xf32, #tpu.memory_space<vmem>>, vector<8x128xf32>,
    %c5 = arith.constant 5 : index
    %c0_16 = arith.constant 0 : index
    %16 = vector.load %arg15[%c5, %c0_16] : memref<16x128xf32, #tpu.memory_space<vmem>>, vector<8x128xf32>
    %c0_17 = arith.constant 0 : index
    %c0_18 = arith.constant 0 : index
    %17 = vector.load %arg4[%c0_17, %c0_18] : memref<4x128xf32, #tpu.memory_space<vmem>>, vector<1x128xf32>
    %18 = vector.broadcast %17 : vector<1x128xf32> to vector<8x128xf32>
    %19 = arith.mulf %16, %18 : vector<8x128xf32>
    %c6 = arith.constant 6 : index
    %c0_19 = arith.constant 0 : index
    %20 = vector.load %arg15[%c6, %c0_19] : memref<16x128xf32, #tpu.memory_space<vmem>>, vector<8x128xf32>
    %c1 = arith.constant 1 : index
    %c0_20 = arith.constant 0 : index
    %21 = vector.load %arg4[%c1, %c0_20] : memref<4x128xf32, #tpu.memory_space<vmem>>, vector<1x128xf32>
    %22 = vector.broadcast %21 : vector<1x128xf32> to vector<8x128xf32>
    %23 = arith.mulf %20, %22 : vector<8x128xf32>
    %24 = arith.addf %19, %23 : vector<8x128xf32>
    %c7 = arith.constant 7 : index
    %c0_21 = arith.constant 0 : index
    %25 = vector.load %arg15[%c7, %c0_21] : memref<16x128xf32, #tpu.memory_space<vmem>>, vector<8x128xf32>
    %c2 = arith.constant 2 : index
    %c0_22 = arith.constant 0 : index
    %26 = vector.load %arg4[%c2, %c0_22] : memref<4x128xf32, #tpu.memory_space<vmem>>, vector<1x128xf32>
    %27 = vector.broadcast %26 : vector<1x128xf32> to vector<8x128xf32>
    %28 = arith.mulf %25, %27 : vector<8x128xf32>
    %29 = arith.addf %24, %28 : vector<8x128xf32>
    %c8_23 = arith.constant 8 : index
    %c0_24 = arith.constant 0 : index
    %30 = vector.load %arg15[%c8_23, %c0_24] : memref<16x128xf32, #tpu.memory_space<vmem>>, vector<8x128xf32>
    %c3 = arith.constant 3 : index
    %c0_25 = arith.constant 0 : index
    %31 = vector.load %arg4[%c3, %c0_25] : memref<4x128xf32, #tpu.memory_space<vmem>>, vector<1x128xf32>
    %32 = vector.broadcast %31 : vector<1x128xf32> to vector<8x128xf32>
    %33 = arith.mulf %30, %32 : vector<8x128xf32>
    %34 = arith.addf %29, %33 : vector<8x128xf32>
    %c0_26 = arith.constant 0 : index
    %c0_27 = arith.constant 0 : index
    %35 = vector.load %arg5[%c0_26, %c0_27] : memref<1x128xf32, #tpu.memory_space<vmem>>, vector<1x128xf32>
    %36 = vector.broadcast %35 : vector<1x128xf32> to vector<8x128xf32>
    %37 = arith.addf %34, %36 : vector<8x128xf32>
    %38 = arith.negf %37 : vector<8x128xf32>
    %39 = math.exp %38 : vector<8x128xf32>
    %cst_28 = arith.constant 1.000000e+00 : f32
    %40 = vector.broadcast %cst_28 : f32 to vector<8x128xf32>
    %41 = arith.addf %40, %39 : vector<8x128xf32>
    %42 = arith.divf %40, %41 : vector<8x128xf32>
    %43 = arith.mulf %37, %42 : vector<8x128xf32>
    %c0_29 = arith.constant 0 : index
    %c0_30 = arith.constant 0 : index
    %44 = vector.load %arg18[%c0_29, %c0_30] : memref<8x128xf32, #tpu.memory_space<vmem>>, vector<8x128xf32>
    tpu.vector_store %arg18[%c0_29, %c0_30], %43 {strides = array<i32>} : memref<8x128xf32, #tpu.memory_space<vmem>>, vector<8x128xf32>,
    %45 = arith.truncf %43 : vector<8x128xf32> to vector<8x128xbf16>
    %c0_31 = arith.constant 0 : index
    %c0_32 = arith.constant 0 : index
    %46 = vector.load %arg6[%c0_31, %c0_32] : memref<128x384xbf16, #tpu.memory_space<vmem>>, vector<128x384xbf16>
    %cst_33 = arith.constant dense<0.000000e+00> : vector<8x384xf32>
    %47 = tpu.matmul %45, %46, %cst_33 {dimension_numbers = #tpu.dot_dimension_numbers<[1], [0], [0], [1], [0, 0, 1, 1], [], []>} : vector<8x128xbf16>, vector<128x384xbf16>, vector<8x384xf32> -> vector<8x384xf32>
    %48 = vector.extract_strided_slice %47 {offsets = [0, 128], sizes = [8, 256], strides = [1, 1]} : vector<8x384xf32> to vector<8x256xf32>
    %c0_34 = arith.constant 0 : index
    %c0_35 = arith.constant 0 : index
    %49 = vector.load %arg20[%c0_34, %c0_35] : memref<8x256xf32, #tpu.memory_space<vmem>>, vector<8x256xf32>
    tpu.vector_store %arg20[%c0_34, %c0_35], %48 {strides = array<i32>} : memref<8x256xf32, #tpu.memory_space<vmem>>, vector<8x256xf32>,
    %50 = vector.extract_strided_slice %47 {offsets = [0, 0], sizes = [8, 128], strides = [1, 1]} : vector<8x384xf32> to vector<8x128xf32>
    %51 = arith.truncf %50 : vector<8x128xf32> to vector<8x128xbf16>
    %c0_36 = arith.constant 0 : index
    %c0_37 = arith.constant 0 : index
    %52 = vector.load %arg7[%c0_36, %c0_37] : memref<128x128xbf16, #tpu.memory_space<vmem>>, vector<128x128xbf16>
    %cst_38 = arith.constant dense<0.000000e+00> : vector<8x128xf32>
    %53 = tpu.matmul %51, %52, %cst_38 {dimension_numbers = #tpu.dot_dimension_numbers<[1], [0], [0], [1], [0, 0, 1, 1], [], []>} : vector<8x128xbf16>, vector<128x128xbf16>, vector<8x128xf32> -> vector<8x128xf32>
    %c0_39 = arith.constant 0 : index
    %c0_40 = arith.constant 0 : index
    %54 = vector.load %arg8[%c0_39, %c0_40] : memref<1x128xf32, #tpu.memory_space<vmem>>, vector<1x128xf32>
    %55 = vector.broadcast %54 : vector<1x128xf32> to vector<8x128xf32>
    %56 = arith.addf %53, %55 : vector<8x128xf32>
    %cst_41 = arith.constant 0.000000e+00 : f32
    %57 = vector.broadcast %cst_41 : f32 to vector<8x128xf32>
    %58 = arith.maximumf %56, %57 : vector<8x128xf32>
    %59 = vector.broadcast %cst_41 : f32 to vector<8x128xf32>
    %60 = arith.subf %56, %59 : vector<8x128xf32>
    %61 = arith.cmpf one, %60, %60 : vector<8x128xf32>
    %62 = vector.broadcast %cst_41 : f32 to vector<8x128xf32>
    %63 = arith.addf %56, %62 : vector<8x128xf32>
    %64 = math.absf %60 : vector<8x128xf32>
    %cst_42 = arith.constant 0.000000e+00 : f32
    %65 = vector.broadcast %cst_42 : f32 to vector<8x128xf32>
    %66 = arith.subf %65, %64 : vector<8x128xf32>
    %67 = math.exp %66 : vector<8x128xf32>
    %68 = math.log1p %67 : vector<8x128xf32>
    %69 = arith.addf %58, %68 : vector<8x128xf32>
    %70 = arith.select %61, %63, %69 : vector<8x128xi1>, vector<8x128xf32>
    %c0_43 = arith.constant 0 : index
    %c0_44 = arith.constant 0 : index
    %71 = vector.load %arg19[%c0_43, %c0_44] : memref<8x128xf32, #tpu.memory_space<vmem>>, vector<8x128xf32>
    tpu.vector_store %arg19[%c0_43, %c0_44], %70 {strides = array<i32>} : memref<8x128xf32, #tpu.memory_space<vmem>>, vector<8x128xf32>,
    %c0_45 = arith.constant 0 : index
    %c0_46 = arith.constant 0 : index
    %72 = vector.load %arg9[%c0_45, %c0_46] : memref<16x128xf32, #tpu.memory_space<vmem>>, vector<16x128xf32>
    %c0_47 = arith.constant 0 : index
    %c0_48 = arith.constant 0 : index
    %73 = vector.load %arg10[%c0_47, %c0_48] : memref<1x128xf32, #tpu.memory_space<vmem>>, vector<1x128xf32>
    %c0_49 = arith.constant 0 : index
    %c0_50 = arith.constant 0 : index
    %74 = vector.load %arg17[%c0_49, %c0_50] : memref<16x128xf32, #tpu.memory_space<vmem>>, vector<16x128xf32>
    %c0_i32_51 = arith.constant 0 : i32
    %c8_i32 = arith.constant 8 : i32
    %75 = arith.muli %c0_i32_51, %c8_i32 : i32
    %76 = tpu.assume_multiple %75, 8 : i32
    %77 = arith.index_cast %76 : i32 to index
    %c0_52 = arith.constant 0 : index
    %78 = vector.load %arg19[%77, %c0_52] : memref<8x128xf32, #tpu.memory_space<vmem>>, vector<8x128xf32>
    %79 = arith.index_cast %76 : i32 to index
    %c0_53 = arith.constant 0 : index
    %80 = vector.load %arg18[%79, %c0_53] : memref<8x128xf32, #tpu.memory_space<vmem>>, vector<8x128xf32>
    %81 = arith.index_cast %76 : i32 to index
    %c0_54 = arith.constant 0 : index
    %82 = vector.load %arg21[%81, %c0_54] : memref<8x128xf32, #tpu.memory_space<vmem>>, vector<8x128xf32>
    %83 = arith.index_cast %76 : i32 to index
    %c0_55 = arith.constant 0 : index
    %84 = vector.load %arg20[%83, %c0_55] : memref<8x256xf32, #tpu.memory_space<vmem>>, vector<8x16xf32>
    %85 = arith.index_cast %76 : i32 to index
    %c128 = arith.constant 128 : index
    %86 = vector.load %arg20[%85, %c128] : memref<8x256xf32, #tpu.memory_space<vmem>>, vector<8x16xf32>
    %87 = vector.shape_cast %78 : vector<8x128xf32> to vector<8x1x128xf32>
    %88 = vector.shape_cast %72 : vector<16x128xf32> to vector<1x16x128xf32>
    %89 = vector.broadcast %87 : vector<8x1x128xf32> to vector<8x16x128xf32>
    %90 = vector.broadcast %88 : vector<1x16x128xf32> to vector<8x16x128xf32>
    %91 = arith.mulf %89, %90 : vector<8x16x128xf32>
    %92 = math.exp %91 : vector<8x16x128xf32>
    %93 = arith.mulf %78, %80 : vector<8x128xf32>
    %94 = vector.shape_cast %93 : vector<8x128xf32> to vector<8x1x128xf32>
    %95 = vector.shape_cast %84 : vector<8x16xf32> to vector<8x16x1xf32>
    %96 = vector.broadcast %94 : vector<8x1x128xf32> to vector<8x16x128xf32>
    %97 = vector.broadcast %95 : vector<8x16x1xf32> to vector<8x16x128xf32>
    %98 = arith.mulf %96, %97 : vector<8x16x128xf32>
    %99 = vector.extract_strided_slice %92 {offsets = [0, 0, 0], sizes = [1, 16, 128], strides = [1, 1, 1]} : vector<8x16x128xf32> to vector<1x16x128xf32>
    %100 = vector.shape_cast %99 : vector<1x16x128xf32> to vector<16x128xf32>
    %101 = arith.mulf %100, %74 : vector<16x128xf32>
    %102 = vector.extract_strided_slice %98 {offsets = [0, 0, 0], sizes = [1, 16, 128], strides = [1, 1, 1]} : vector<8x16x128xf32> to vector<1x16x128xf32>
    %103 = vector.shape_cast %102 : vector<1x16x128xf32> to vector<16x128xf32>
    %104 = arith.addf %101, %103 : vector<16x128xf32>
    %105 = vector.extract_strided_slice %92 {offsets = [1, 0, 0], sizes = [1, 16, 128], strides = [1, 1, 1]} : vector<8x16x128xf32> to vector<1x16x128xf32>
    %106 = vector.shape_cast %105 : vector<1x16x128xf32> to vector<16x128xf32>
    %107 = arith.mulf %106, %104 : vector<16x128xf32>
    %108 = vector.extract_strided_slice %98 {offsets = [1, 0, 0], sizes = [1, 16, 128], strides = [1, 1, 1]} : vector<8x16x128xf32> to vector<1x16x128xf32>
    %109 = vector.shape_cast %108 : vector<1x16x128xf32> to vector<16x128xf32>
    %110 = arith.addf %107, %109 : vector<16x128xf32>
    %111 = vector.extract_strided_slice %92 {offsets = [2, 0, 0], sizes = [1, 16, 128], strides = [1, 1, 1]} : vector<8x16x128xf32> to vector<1x16x128xf32>
    %112 = vector.shape_cast %111 : vector<1x16x128xf32> to vector<16x128xf32>
    %113 = arith.mulf %112, %110 : vector<16x128xf32>
    %114 = vector.extract_strided_slice %98 {offsets = [2, 0, 0], sizes = [1, 16, 128], strides = [1, 1, 1]} : vector<8x16x128xf32> to vector<1x16x128xf32>
    %115 = vector.shape_cast %114 : vector<1x16x128xf32> to vector<16x128xf32>
    %116 = arith.addf %113, %115 : vector<16x128xf32>
    %117 = vector.extract_strided_slice %92 {offsets = [3, 0, 0], sizes = [1, 16, 128], strides = [1, 1, 1]} : vector<8x16x128xf32> to vector<1x16x128xf32>
    %118 = vector.shape_cast %117 : vector<1x16x128xf32> to vector<16x128xf32>
    %119 = arith.mulf %118, %116 : vector<16x128xf32>
    %120 = vector.extract_strided_slice %98 {offsets = [3, 0, 0], sizes = [1, 16, 128], strides = [1, 1, 1]} : vector<8x16x128xf32> to vector<1x16x128xf32>
    %121 = vector.shape_cast %120 : vector<1x16x128xf32> to vector<16x128xf32>
    %122 = arith.addf %119, %121 : vector<16x128xf32>
    %123 = vector.extract_strided_slice %92 {offsets = [4, 0, 0], sizes = [1, 16, 128], strides = [1, 1, 1]} : vector<8x16x128xf32> to vector<1x16x128xf32>
    %124 = vector.shape_cast %123 : vector<1x16x128xf32> to vector<16x128xf32>
    %125 = arith.mulf %124, %122 : vector<16x128xf32>
    %126 = vector.extract_strided_slice %98 {offsets = [4, 0, 0], sizes = [1, 16, 128], strides = [1, 1, 1]} : vector<8x16x128xf32> to vector<1x16x128xf32>
    %127 = vector.shape_cast %126 : vector<1x16x128xf32> to vector<16x128xf32>
    %128 = arith.addf %125, %127 : vector<16x128xf32>
    %129 = vector.extract_strided_slice %92 {offsets = [5, 0, 0], sizes = [1, 16, 128], strides = [1, 1, 1]} : vector<8x16x128xf32> to vector<1x16x128xf32>
    %130 = vector.shape_cast %129 : vector<1x16x128xf32> to vector<16x128xf32>
    %131 = arith.mulf %130, %128 : vector<16x128xf32>
    %132 = vector.extract_strided_slice %98 {offsets = [5, 0, 0], sizes = [1, 16, 128], strides = [1, 1, 1]} : vector<8x16x128xf32> to vector<1x16x128xf32>
    %133 = vector.shape_cast %132 : vector<1x16x128xf32> to vector<16x128xf32>
    %134 = arith.addf %131, %133 : vector<16x128xf32>
    %135 = vector.extract_strided_slice %92 {offsets = [6, 0, 0], sizes = [1, 16, 128], strides = [1, 1, 1]} : vector<8x16x128xf32> to vector<1x16x128xf32>
    %136 = vector.shape_cast %135 : vector<1x16x128xf32> to vector<16x128xf32>
    %137 = arith.mulf %136, %134 : vector<16x128xf32>
    %138 = vector.extract_strided_slice %98 {offsets = [6, 0, 0], sizes = [1, 16, 128], strides = [1, 1, 1]} : vector<8x16x128xf32> to vector<1x16x128xf32>
    %139 = vector.shape_cast %138 : vector<1x16x128xf32> to vector<16x128xf32>
    %140 = arith.addf %137, %139 : vector<16x128xf32>
    %141 = vector.extract_strided_slice %92 {offsets = [7, 0, 0], sizes = [1, 16, 128], strides = [1, 1, 1]} : vector<8x16x128xf32> to vector<1x16x128xf32>
    %142 = vector.shape_cast %141 : vector<1x16x128xf32> to vector<16x128xf32>
    %143 = arith.mulf %142, %140 : vector<16x128xf32>
    %144 = vector.extract_strided_slice %98 {offsets = [7, 0, 0], sizes = [1, 16, 128], strides = [1, 1, 1]} : vector<8x16x128xf32> to vector<1x16x128xf32>
    %145 = vector.shape_cast %144 : vector<1x16x128xf32> to vector<16x128xf32>
    %146 = arith.addf %143, %145 : vector<16x128xf32>
    %147 = vector.shape_cast %104 : vector<16x128xf32> to vector<1x16x128xf32>
    %148 = vector.shape_cast %110 : vector<16x128xf32> to vector<1x16x128xf32>
    %149 = vector.shape_cast %116 : vector<16x128xf32> to vector<1x16x128xf32>
    %150 = vector.shape_cast %122 : vector<16x128xf32> to vector<1x16x128xf32>
    %151 = vector.shape_cast %128 : vector<16x128xf32> to vector<1x16x128xf32>
    %152 = vector.shape_cast %134 : vector<16x128xf32> to vector<1x16x128xf32>
    %153 = vector.shape_cast %140 : vector<16x128xf32> to vector<1x16x128xf32>
    %154 = vector.shape_cast %146 : vector<16x128xf32> to vector<1x16x128xf32>
    %155 = tpu.concatenate %147, %148, %149, %150, %151, %152, %153, %154 in 0 : vector<1x16x128xf32>, vector<1x16x128xf32>, vector<1x16x128xf32>, vector<1x16x128xf32>, vector<1x16x128xf32>, vector<1x16x128xf32>, vector<1x16x128xf32>, vector<1x16x128xf32> -> vector<8x16x128xf32>
    %156 = vector.shape_cast %86 : vector<8x16xf32> to vector<8x16x1xf32>
    %157 = vector.broadcast %156 : vector<8x16x1xf32> to vector<8x16x128xf32>
    %158 = arith.mulf %157, %155 : vector<8x16x128xf32>
    %cst_56 = arith.constant dense<0.000000e+00> : vector<8x128xf32>
    %159 = vector.multi_reduction <add>, %158, %cst_56 [1] : vector<8x16x128xf32> to vector<8x128xf32>
    %160 = vector.broadcast %73 : vector<1x128xf32> to vector<8x128xf32>
    %161 = arith.mulf %160, %80 : vector<8x128xf32>
    %162 = arith.addf %159, %161 : vector<8x128xf32>
    %163 = arith.negf %82 : vector<8x128xf32>
    %164 = math.exp %163 : vector<8x128xf32>
    %cst_57 = arith.constant 1.000000e+00 : f32
    %165 = vector.broadcast %cst_57 : f32 to vector<8x128xf32>
    %166 = arith.addf %165, %164 : vector<8x128xf32>
    %167 = arith.divf %165, %166 : vector<8x128xf32>
    %168 = arith.mulf %82, %167 : vector<8x128xf32>
    %169 = arith.mulf %162, %168 : vector<8x128xf32>
    %170 = arith.index_cast %76 : i32 to index
    %c0_58 = arith.constant 0 : index
    %171 = vector.load %arg22[%170, %c0_58] : memref<8x128xf32, #tpu.memory_space<vmem>>, vector<8x128xf32>
    tpu.vector_store %arg22[%170, %c0_58], %169 {strides = array<i32>} : memref<8x128xf32, #tpu.memory_space<vmem>>, vector<8x128xf32>,
    %c1_i32 = arith.constant 1 : i32
    %c0_59 = arith.constant 0 : index
    %c0_60 = arith.constant 0 : index
    %172 = vector.load %arg17[%c0_59, %c0_60] : memref<16x128xf32, #tpu.memory_space<vmem>>, vector<16x128xf32>
    tpu.vector_store %arg17[%c0_59, %c0_60], %146 {strides = array<i32>} : memref<16x128xf32, #tpu.memory_space<vmem>>, vector<16x128xf32>,
    %c0_61 = arith.constant 0 : index
    %c0_62 = arith.constant 0 : index
    %173 = vector.load %arg22[%c0_61, %c0_62] : memref<8x128xf32, #tpu.memory_space<vmem>>, vector<8x128xf32>
    %174 = arith.truncf %173 : vector<8x128xf32> to vector<8x128xbf16>
    %c0_63 = arith.constant 0 : index
    %c0_64 = arith.constant 0 : index
    %175 = vector.load %arg11[%c0_63, %c0_64] : memref<128x128xbf16, #tpu.memory_space<vmem>>, vector<128x128xbf16>
    %cst_65 = arith.constant dense<0.000000e+00> : vector<8x128xf32>
    %176 = tpu.matmul %174, %175, %cst_65 {dimension_numbers = #tpu.dot_dimension_numbers<[1], [0], [0], [1], [0, 0, 1, 1], [], []>} : vector<8x128xbf16>, vector<128x128xbf16>, vector<8x128xf32> -> vector<8x128xf32>
    %177 = tpu.iota {dimensions = array<i32: 1>} : vector<1x128xi32>
    %c32_i32 = arith.constant 32 : i32
    %178 = vector.broadcast %c32_i32 : i32 to vector<1x128xi32>
    %179 = arith.cmpi slt, %177, %178 : vector<1x128xi32>
    %180 = arith.extui %179 : vector<1x128xi1> to vector<1x128xi32>
    %181 = arith.sitofp %180 : vector<1x128xi32> to vector<1x128xf32>
    %cst_66 = arith.constant dense<0.000000e+00> : vector<8xf32>
    %182 = vector.multi_reduction <add>, %176, %cst_66 [1] : vector<8x128xf32> to vector<8xf32>
    %183 = vector.shape_cast %182 : vector<8xf32> to vector<8x1xf32>
    %cst_67 = arith.constant 3.125000e-02 : f32
    %184 = vector.broadcast %cst_67 : f32 to vector<8x1xf32>
    %185 = arith.mulf %183, %184 : vector<8x1xf32>
    %186 = vector.broadcast %185 : vector<8x1xf32> to vector<8x128xf32>
    %187 = arith.subf %176, %186 : vector<8x128xf32>
    %188 = vector.broadcast %181 : vector<1x128xf32> to vector<8x128xf32>
    %189 = arith.mulf %187, %188 : vector<8x128xf32>
    %190 = arith.mulf %189, %189 : vector<8x128xf32>
    %cst_68 = arith.constant dense<0.000000e+00> : vector<8xf32>
    %191 = vector.multi_reduction <add>, %190, %cst_68 [1] : vector<8x128xf32> to vector<8xf32>
    %192 = vector.shape_cast %191 : vector<8xf32> to vector<8x1xf32>
    %cst_69 = arith.constant 3.125000e-02 : f32
    %193 = vector.broadcast %cst_69 : f32 to vector<8x1xf32>
    %194 = arith.mulf %192, %193 : vector<8x1xf32>
    %cst_70 = arith.constant 9.99999974E-6 : f32
    %195 = vector.broadcast %cst_70 : f32 to vector<8x1xf32>
    %196 = arith.addf %194, %195 : vector<8x1xf32>
    %197 = math.rsqrt %196 : vector<8x1xf32>
    %198 = vector.broadcast %197 : vector<8x1xf32> to vector<8x128xf32>
    %199 = arith.mulf %189, %198 : vector<8x128xf32>
    %c0_71 = arith.constant 0 : index
    %c0_72 = arith.constant 0 : index
    %200 = vector.load %arg12[%c0_71, %c0_72] : memref<1x128xf32, #tpu.memory_space<vmem>>, vector<1x128xf32>
    %201 = vector.broadcast %200 : vector<1x128xf32> to vector<8x128xf32>
    %202 = arith.mulf %199, %201 : vector<8x128xf32>
    %c0_73 = arith.constant 0 : index
    %c0_74 = arith.constant 0 : index
    %203 = vector.load %arg13[%c0_73, %c0_74] : memref<1x128xf32, #tpu.memory_space<vmem>>, vector<1x128xf32>
    %204 = vector.broadcast %203 : vector<1x128xf32> to vector<8x128xf32>
    %205 = arith.addf %202, %204 : vector<8x128xf32>
    %c0_75 = arith.constant 0 : index
    %c0_76 = arith.constant 0 : index
    %c0_77 = arith.constant 0 : index
    %206 = vector.load %arg2[%c0_75, %c0_76, %c0_77] : memref<1x8x128xf32, #tpu.memory_space<vmem>>, vector<1x8x128xf32>
    %207 = vector.shape_cast %206 : vector<1x8x128xf32> to vector<8x128xf32>
    %208 = arith.negf %205 : vector<8x128xf32>
    %209 = math.exp %208 : vector<8x128xf32>
    %cst_78 = arith.constant 1.000000e+00 : f32
    %210 = vector.broadcast %cst_78 : f32 to vector<8x128xf32>
    %211 = arith.addf %210, %209 : vector<8x128xf32>
    %212 = arith.divf %210, %211 : vector<8x128xf32>
    %213 = arith.mulf %205, %212 : vector<8x128xf32>
    %214 = arith.addf %207, %213 : vector<8x128xf32>
    %c0_79 = arith.constant 0 : index
    %c0_80 = arith.constant 0 : index
    %c0_81 = arith.constant 0 : index
    %215 = vector.load %arg14[%c0_79, %c0_80, %c0_81] : memref<1x8x128xf32, #tpu.memory_space<vmem>>, vector<1x8x128xf32>
    %216 = vector.shape_cast %215 : vector<1x8x128xf32> to vector<8x128xf32>
    %217 = vector.shape_cast %214 : vector<8x128xf32> to vector<1x8x128xf32>
    tpu.vector_store %arg14[%c0_79, %c0_80, %c0_81], %217 {strides = array<i32>} : memref<1x8x128xf32, #tpu.memory_space<vmem>>, vector<1x8x128xf32>,
    return
  }
  func.func @transform_0(%arg0: i32, %arg1: i32) -> (i32, i32, i32) {
    %c0_i32 = arith.constant 0 : i32
    %c0_i32_0 = arith.constant 0 : i32
    return %arg0, %arg1, %c0_i32 : i32, i32, i32
  }
  func.func @transform_1(%arg0: i32, %arg1: i32) -> (i32, i32) {
    %c0_i32 = arith.constant 0 : i32
    %c0_i32_0 = arith.constant 0 : i32
    %c0_i32_1 = arith.constant 0 : i32
    return %c0_i32, %c0_i32_0 : i32, i32
  }
  func.func @transform_2(%arg0: i32, %arg1: i32) -> (i32, i32) {
    %c0_i32 = arith.constant 0 : i32
    %c0_i32_0 = arith.constant 0 : i32
    %c0_i32_1 = arith.constant 0 : i32
    return %c0_i32, %c0_i32_0 : i32, i32
  }
  func.func @transform_3(%arg0: i32, %arg1: i32) -> (i32, i32) {
    %c0_i32 = arith.constant 0 : i32
    %c0_i32_0 = arith.constant 0 : i32
    %c0_i32_1 = arith.constant 0 : i32
    return %c0_i32, %c0_i32_0 : i32, i32
  }
  func.func @transform_4(%arg0: i32, %arg1: i32) -> (i32, i32) {
    %c0_i32 = arith.constant 0 : i32
    %c0_i32_0 = arith.constant 0 : i32
    %c0_i32_1 = arith.constant 0 : i32
    return %c0_i32, %c0_i32_0 : i32, i32
  }
  func.func @transform_5(%arg0: i32, %arg1: i32) -> (i32, i32) {
    %c0_i32 = arith.constant 0 : i32
    %c0_i32_0 = arith.constant 0 : i32
    %c0_i32_1 = arith.constant 0 : i32
    return %c0_i32, %c0_i32_0 : i32, i32
  }
  func.func @transform_6(%arg0: i32, %arg1: i32) -> (i32, i32) {
    %c0_i32 = arith.constant 0 : i32
    %c0_i32_0 = arith.constant 0 : i32
    %c0_i32_1 = arith.constant 0 : i32
    return %c0_i32, %c0_i32_0 : i32, i32
  }
  func.func @transform_7(%arg0: i32, %arg1: i32) -> (i32, i32) {
    %c0_i32 = arith.constant 0 : i32
    %c0_i32_0 = arith.constant 0 : i32
    %c0_i32_1 = arith.constant 0 : i32
    return %c0_i32, %c0_i32_0 : i32, i32
  }
  func.func @transform_8(%arg0: i32, %arg1: i32) -> (i32, i32) {
    %c0_i32 = arith.constant 0 : i32
    %c0_i32_0 = arith.constant 0 : i32
    %c0_i32_1 = arith.constant 0 : i32
    return %c0_i32, %c0_i32_0 : i32, i32
  }
  func.func @transform_9(%arg0: i32, %arg1: i32) -> (i32, i32) {
    %c0_i32 = arith.constant 0 : i32
    %c0_i32_0 = arith.constant 0 : i32
    %c0_i32_1 = arith.constant 0 : i32
    return %c0_i32, %c0_i32_0 : i32, i32
  }
  func.func @transform_10(%arg0: i32, %arg1: i32) -> (i32, i32) {
    %c0_i32 = arith.constant 0 : i32
    %c0_i32_0 = arith.constant 0 : i32
    %c0_i32_1 = arith.constant 0 : i32
    return %c0_i32, %c0_i32_0 : i32, i32
  }
  func.func @transform_11(%arg0: i32, %arg1: i32) -> (i32, i32) {
    %c0_i32 = arith.constant 0 : i32
    %c0_i32_0 = arith.constant 0 : i32
    %c0_i32_1 = arith.constant 0 : i32
    return %c0_i32, %c0_i32_0 : i32, i32
  }
  func.func @transform_12(%arg0: i32, %arg1: i32) -> (i32, i32, i32) {
    %c0_i32 = arith.constant 0 : i32
    %c0_i32_0 = arith.constant 0 : i32
    return %arg0, %arg1, %c0_i32 : i32, i32, i32
  }
}

</mosaic_0001>

<bundles_post_ra>
// kernel: tpu_custom_call.1
= control target key start
LH: loop header
LB: loop body
LE: loop exit
PB: predicated region body
PF: predicated region fallthrough
CT: control target
= control target key end

     0   :  { %s3260_s0 = inlined_call_operand.hbm [shape: f32[2,8,128], index: 0, kind: input, shape index: {}]   ;;  %s3261_s1 = inlined_call_operand.hbm [shape: bf16[128,256], index: 1, kind: input, shape index: {}]   ;;  %s3262_s2 = inlined_call_operand.hbm [shape: f32[4,128], index: 2, kind: input, shape index: {}]   ;;  %s3263_s3 = inlined_call_operand.vmem [shape: f32[1,128], index: 3, kind: input, shape index: {}]   ;;  %s3264_s4 = inlined_call_operand.hbm [shape: bf16[128,384], index: 4, kind: input, shape index: {}]   ;;  %s3265_s5 = inlined_call_operand.hbm [shape: bf16[128,128], index: 5, kind: input, shape index: {}]   ;;  %s3266_s6 = inlined_call_operand.vmem [shape: f32[1,128], index: 6, kind: input, shape index: {}]   ;;  %s3267_s7 = inlined_call_operand.hbm [shape: f32[16,128], index: 7, kind: input, shape index: {}]   ;;  %s3268_s8 = inlined_call_operand.vmem [shape: f32[1,128], index: 8, kind: input, shape index: {}]   ;;  %s3269_s9 = inlined_call_operand.hbm [shape: bf16[128,128], index: 9, kind: input, shape index: {}]   ;;  %s3270_s10 = inlined_call_operand.vmem [shape: f32[1,128], index: 10, kind: input, shape index: {}]   ;;  %s3271_s11 = inlined_call_operand.vmem [shape: f32[1,128], index: 11, kind: input, shape index: {}]   ;;  %s3272_s12 = inlined_call_operand.hbm [shape: f32[2,8,128], index: 12, kind: output, shape index: {}]  }
   0x1   :  { %3277 = sst [smem:[#allocation28_spill]] %s3261_s1 }
   0x2   :  { %3278 = sst [smem:[#allocation29_spill]] %s3262_s2 }
   0x3   :  { %3279 = sst [smem:[#allocation30_spill]] %s3264_s4 }
   0x4   :  { %3280 = sst [smem:[#allocation31_spill]] %s3265_s5 }
   0x5   :  { %3281 = sst [smem:[#allocation32_spill]] %s3267_s7 }
   0x6   :  { %3282 = sst [smem:[#allocation33_spill]] %s3269_s9 }
   0x7   :  { %3283 = sst [smem:[#allocation34_spill]] %s3270_s10 }
   0x8   :  { %3284 = sst [smem:[#allocation35_spill]] %s3271_s11 }
   0x9   :  { %3285 = sst [smem:[#allocation36_spill]] %s3272_s12 }
   0xa   :  { %17 = vsyncpa [#allocation11], 0 }
   0xb   :  { %19 = vsyncpa [#allocation11 + $0x1], 0 }
   0xc   :  { %20 = vsyncpa [#allocation14], 0 }
   0xd   :  { %21 = vsyncpa [#allocation17], 0 }
   0xe   :  { %22 = vsyncpa [#allocation20], 0 }
   0xf   :  { %23 = vsyncpa [#allocation12], 0 }
  0x10   :  { %25 = vsyncpa [#allocation12 + $0x1], 0  ;;  %s2838_s21 = smov 0   ;;  %s2840_s22 = smov 0  }
  0x11   :  { %s2842_s23 = smov 0   ;;  %s2844_s24 = smov 0  }
  0x12   :  { %s2846_s25 = smov 0   ;;  %s2848_s26 = smov 0  }
  0x13 LB: > { %s3273_s27 = sadd.s32 4294967295, %s2753_s26   ;;  %p2042_p0 = scmp.ge.s32.totalorder %s2753_s26, 1  ;;  %s2753_s26 = sphi %s2848_s26, %s31_s26   ;;  %s2749_s25 = sphi %s2846_s25, %s3313_s25   ;;  %s2745_s24 = sphi %s2844_s24, %s3312_s24   ;;  %s2741_s23 = sphi %s2842_s23, %s3311_s23   ;;  %s2737_s22 = sphi %s2840_s22, %s3310_s22   ;;  %s2733_s21 = sphi %s2838_s21, %s3309_s21  }
  0x14   : > { %p2872_p1 = scmp.eq.s32.totalorder %s3273_s27, 0  ;;  %p335_p2 = scmp.lt.s32.totalorder %s2753_s26, 3 }
  0x15   : > { %s2755_s30 = smov [#allocation13]   ;;  %s2756_s15 = smov [#allocation16]  }
  0x16   : > { %p2877_p3 = pnand %p2042_p0, %p335_p2  ;;  %s347_s13 = sshll.u32 %s2755_s30, 4  ;;  %s348_s13 = int_to_ptr.vmem [resolvable:$true] %s347_s13 }
  0x17   : > { %s374_s16 = sshll.u32 %s2756_s15, 4  ;;  %s2488_s18 = scalar_lea.vmem %s348_s13, 2048  ;;  %s375_s16 = int_to_ptr.vmem [resolvable:$true] %s374_s16 }
  0x18   : > { %p2249_p4 = pneg %p2877_p3  ;;  %p2489_p8 = scmp.ne.s32.totalorder %s348_s13, %s2488_s18 }
  0x19   : > { %p2496_p11 = scmp.lt.s32.totalorder %s348_s13, %s348_s13  ;;  %p2497_p12 = scmp.lt.s32.totalorder %s2488_s18, %s2488_s18 }
  0x1a   : > { %p2886_p6 = pnand %p2249_p4, %p2872_p1 }
  0x1b   : > { %p2498_p13 = por %p2497_p12, %p2496_p11 }
  0x1c   : > { %p2892_p7 = pneg %p2886_p6 }
  0x1e   : > { %p2491_p9 = pnand %p2489_p8, %p2892_p7 }
  0x20   : > { %p2492_p10 = pneg %p2491_p9 }
  0x22   : > { %p2499_p0 = pnand %p2498_p13, %p2492_p10 }
  0x24   : > { %2502 = shalt.err (!%p2499_p0)
}
  0x25   : > { %s3275_s19 = smov 128   ;;  %s3276_s20 = smov 8  }
  0x26   : > { %s3290_s1 = sld [smem:[#allocation28_spill]]  ;;  %s2514_s27 = scalar_lea.vmem %s375_s16, 3072 }
  0x27   : > { %p2515_p2 = scmp.ne.s32.totalorder %s375_s16, %s2514_s27  ;;  %p2522_p9 = scmp.lt.s32.totalorder %s375_s16, %s375_s16 }
  0x28   : > { %p2523_p10 = scmp.lt.s32.totalorder %s2514_s27, %s2514_s27 }
  0x29   : > { %p2517_p4 = pnand %p2515_p2, %p2892_p7 }
  0x2a   : > { %p2524_p11 = por %p2523_p10, %p2522_p9 }
  0x2b   : > { %p2518_p8 = pneg %p2517_p4 }
  0x2c   : > { %2252 = dma.hbm_to_vmem [thread:$0]  (!%p2886_p6), %s3290_s1, 2048, %s348_s13, [#allocation14], %s3275_s19, %s3275_s19, %s3276_s20  }
  0x2d   : > { %p2525_p12 = pnand %p2524_p11, %p2518_p8 }
  0x2f   : > { %2528 = shalt.err (!%p2525_p12)
}
  0x30   : > { %s2759_s18 = smov 192   ;;  %s2760_s12 = smov 12  }
  0x31   : > { %s3291_s4 = sld [smem:[#allocation30_spill]]  ;;  %s2761_s13 = smov [#allocation19]  }
  0x32   : > { %s403_s30 = sshll.u32 %s2761_s13, 4  ;;  %s2762_s15 = smov [#allocation15]   ;;  %s404_s30 = int_to_ptr.vmem [resolvable:$true] %s403_s30 }
  0x33   : > { %s361_s19 = sshll.u32 %s2762_s15, 4  ;;  %s2540_s20 = scalar_lea.vmem %s404_s30, 256  ;;  %s362_s19 = int_to_ptr.vmem [resolvable:$true] %s361_s19 }
  0x34   : > { %p2541_p13 = scmp.ne.s32.totalorder %s404_s30, %s2540_s20  ;;  %p2548_p4 = scmp.lt.s32.totalorder %s404_s30, %s404_s30 }
  0x35   : > { %p2549_p8 = scmp.lt.s32.totalorder %s2540_s20, %s2540_s20 }
  0x36   : > { %p2543_p0 = pnand %p2541_p13, %p2892_p7 }
  0x37   : > { %2258 = dma.hbm_to_vmem [thread:$0]  (!%p2886_p6), %s3291_s4, 3072, %s375_s16, [#allocation17], %s2759_s18, %s2759_s18, %s2760_s12  }
  0x38   : > { %p2544_p2 = pneg %p2543_p0  ;;  %p2550_p9 = por %p2549_p8, %p2548_p4 }
  0x3a   : > { %p2551_p10 = pnand %p2550_p9, %p2544_p2 }
  0x3c   : > { %2554 = shalt.err (!%p2551_p10)
}
  0x3d   : > { %s3292_s10 = smov 8   ;;  %s3293_s11 = smov 128  }
  0x3e   : > { %s3294_s7 = sld [smem:[#allocation32_spill]]  ;;  %s2566_s16 = scalar_lea.vmem %s362_s19, 64 }
  0x3f   : > { %p2567_p11 = scmp.ne.s32.totalorder %s362_s19, %s2566_s16  ;;  %p2574_p0 = scmp.lt.s32.totalorder %s362_s19, %s362_s19 }
  0x40   : > { %p2575_p5 = scmp.lt.s32.totalorder %s2566_s16, %s2566_s16 }
  0x41   : > { %p2569_p12 = pnand %p2567_p11, %p2892_p7 }
  0x42   : > { %p2576_p4 = por %p2575_p5, %p2574_p0 }
  0x43   : > { %p2570_p13 = pneg %p2569_p12 }
  0x44   : > { %2264 = dma.hbm_to_vmem [thread:$0]  (!%p2886_p6), %s3294_s7, 256, %s404_s30, [#allocation20], %s3293_s11, %s3293_s11, %s3292_s10  }
  0x45   : > { %p2577_p2 = pnand %p2576_p4, %p2570_p13 }
  0x47   : > { %2580 = shalt.err (!%p2577_p2)
}
  0x48   : > { %s3295_s2 = sld [smem:[#allocation29_spill]]  ;;  %s2763_s13 = smov [#allocation18]  }
  0x49   : > { %s387_s15 = sshll.u32 %s2763_s13, 4  ;;  %s388_s15 = int_to_ptr.vmem [resolvable:$true] %s387_s15 }
  0x4a   : > { %s2592_s30 = scalar_lea.vmem %s388_s15, 1024  ;;  %p2600_p11 = scmp.lt.s32.totalorder %s388_s15, %s388_s15 }
  0x4b   : > { %p2593_p8 = scmp.ne.s32.totalorder %s388_s15, %s2592_s30  ;;  %p2601_p12 = scmp.lt.s32.totalorder %s2592_s30, %s2592_s30 }
  0x4d   : > { %p2595_p9 = pnand %p2593_p8, %p2892_p7  ;;  %p2602_p5 = por %p2601_p12, %p2600_p11 }
  0x4e   : > { %2255 = dma.hbm_to_vmem [thread:$0]  (!%p2886_p6), %s3295_s2, 64, %s362_s19, [#allocation14]  }
  0x4f   : > { %p2596_p10 = pneg %p2595_p9 }
  0x51   : > { %p2603_p13 = pnand %p2602_p5, %p2596_p10 }
  0x53   : > { %2606 = shalt.err (!%p2603_p13)
}
  0x54   : > { %s2764_s10 = smov 64   ;;  %s2765_s11 = smov 4  }
  0x55   : > { %s3296_s5 = sld [smem:[#allocation31_spill]]  ;;  %s2766_s27 = smov [#allocation21]  }
  0x56   : > { %s419_s16 = sshll.u32 %s2766_s27, 4  ;;  %s420_s16 = int_to_ptr.vmem [resolvable:$true] %s419_s16 }
  0x57   : > { %s2618_s20 = scalar_lea.vmem %s420_s16, 1024  ;;  %p2626_p8 = scmp.lt.s32.totalorder %s420_s16, %s420_s16 }
  0x58   : > { %p2619_p0 = scmp.ne.s32.totalorder %s420_s16, %s2618_s20  ;;  %p2627_p9 = scmp.lt.s32.totalorder %s2618_s20, %s2618_s20 }
  0x5a   : > { %p2621_p4 = pnand %p2619_p0, %p2892_p7  ;;  %p2628_p10 = por %p2627_p9, %p2626_p8 }
  0x5b   : > { %2261 = dma.hbm_to_vmem [thread:$0]  (!%p2886_p6), %s3296_s5, 1024, %s388_s15, [#allocation17], %s2764_s10, %s2764_s10, %s2765_s11  }
  0x5c   : > { %p2622_p2 = pneg %p2621_p4 }
  0x5e   : > { %p2629_p11 = pnand %p2628_p10, %p2622_p2 }
  0x60   : > { %2632 = shalt.err (!%p2629_p11)
}
  0x61   : > { %s3297_s9 = sld [smem:[#allocation33_spill]]  ;;  %s2041_s17 = sadd.s32 4294967294, %s2753_s26  }
  0x62   : > { %s43_s15 = sadd.s32 1, %s2749_s25  ;;  %s52_s14 = sadd.s32 1, %s2741_s23 }
  0x63   : > { %p45_p7 = scmp.ge.s32.totalorder %s43_s15, 2  ;;  %p59_p12 = scmp.ne.s32.totalorder %s2741_s23, %s2737_s22 }
  0x64   : > { %p60_p5 = scmp.eq.s32.totalorder %s2753_s26, 0  ;;  %p65_p0 = scmp.ne.s32.totalorder %s2737_s22, %s2733_s21 }
  0x65   : > { %s3315_s15 = smov (%p45_p7, %s43_s15), 0  ;;  %p328_p9 = scmp.eq.s32.totalorder %s2041_s17, 1 }
  0x66   : > { %p2952_p13 = por %p60_p5, %p59_p12  ;;  %p2964_p2 = por %p2872_p1, %p65_p0 }
  0x67   : > { %2267 = dma.hbm_to_vmem [thread:$0]  (!%p2886_p6), %s3297_s9, 1024, %s420_s16, [#allocation20], %s2764_s10, %s2764_s10, %s2765_s11  }
  0x68   : > { %s47_s10 = ssub.s32 %s2749_s25, %s3315_s15  ;;  %s3299_s11 = sadd.s32 4294967295, %s2753_s26  }
  0x69   : > { %p322_p6 = scmp.eq.s32.totalorder %s3299_s11, 1  ;;  %p50_p4 = scmp.eq.s32.totalorder %s47_s10, 0 }
  0x6a   : > { %p2975_p10 = por %p328_p9, %p65_p0  ;;  %p2282_p11 = scmp.lt.s32.totalorder %s2753_s26, 2 }
  0x6b   : > { %p2968_p8 = por %p322_p6, %p59_p12  ;;  %s439_s20 = sand.u32 1, %s2741_s23  }
  0x6c   : > { %s2973_s27 = scalar_select %p50_p4, %s2741_s23, %s52_s14  }
  0x6d   : > { %s3302_s16 = scalar_select %p2975_p10, 1, 0 }
  0x6e   : > { %s2051_s18 = sshll.u32 %s2749_s25, 7  ;;  %s2050_s13 = sshll.u32 %s439_s20, 3 }
  0x6f   : > { %s449_s1 = scalar_lea.hbm %s3260_s0, %s2051_s18  ;;  %s443_s2 = scalar_lea.vmem [#allocation10], %s2050_s13 }
  0x70   : > { %s451_s4 = sshll.u32 %s443_s2, 4  ;;  %p2987_p7 = pnand %p2282_p11, %p2952_p13  ;;  %s452_s4 = int_to_ptr.vmem [resolvable:$true] %s451_s4 }
  0x71   : > { %s440_s17 = scalar_lea.sflag [#allocation11], %s439_s20  ;;  %s2646_s14 = scalar_lea.vmem %s452_s4, 128 }
  0x72   : > { %p2635_p12 = pneg %p2987_p7  ;;  %p2647_p5 = scmp.ne.s32.totalorder %s452_s4, %s2646_s14 }
  0x73   : > { %s2767_s7 = smov [#allocation10]  }
  0x74   : > { %p2649_p0 = pnand %p2647_p5, %p2635_p12  ;;  %s2651_s9 = sshll.u32 %s2767_s7, 4  ;;  %s2652_s9 = int_to_ptr.vmem [resolvable:$false] %s2651_s9 }
  0x75   : > { %s2653_s18 = scalar_lea.vmem %s2652_s9, 256  ;;  %p2654_p4 = scmp.lt.s32.totalorder %s452_s4, %s2652_s9 }
  0x76   : > { %p2650_p6 = pneg %p2649_p0  ;;  %p2655_p9 = scmp.lt.s32.totalorder %s2653_s18, %s2646_s14 }
  0x78   : > { %p2656_p10 = por %p2655_p9, %p2654_p4 }
  0x7a   : > { %p2657_p13 = pnand %p2656_p10, %p2650_p6 }
  0x7c   : > { %2660 = shalt.err (!%p2657_p13)
}
  0x7d   : > { %2271 = dma.hbm_to_vmem [thread:$0]  (!%p2987_p7), %s449_s1, 128, %s452_s4, %s440_s17  }
  0x7e   : > { %460 = sbr.rel (%p2877_p3) target bundleno = 1484 (0x5cc), region = 68  ;;  %s2998_s2 = sand.u32 (!%p2877_p3), 1, %s2737_s22  }
  0x7f   : > { %s2053_s7 = sshll.u32 (!%p2877_p3), %s2998_s2, 3  ;;  %s463_s30 = scalar_lea.sflag (!%p2877_p3), [#allocation11], %s2998_s2 }
  0x80   : > { %s3004_s9 = scalar_lea.vmem (!%p2877_p3), [#allocation10], %s2053_s7 }
  0x83   : > { %2712 = dma.done.wait (%p2964_p2), %s463_s30, 128  }
  0x84   : > { %2714 = vsyncadd (%p2964_p2), %s463_s30, 4294967168 }
  0x85   : > { %2716 = dma.done.wait (%p2872_p1), [#allocation14], 2112  }
  0x86   : > { %2718 = vsyncadd (%p2872_p1), [#allocation14], 4294965184 }
  0x87   : > { %2720 = dma.done.wait (%p2872_p1), [#allocation17], 4096  }
  0x88   : > { %2722 = vsyncadd (%p2872_p1), [#allocation17], 4294963200 }
  0x89   : > { %2724 = dma.done.wait (%p2872_p1), [#allocation20], 1280  }
  0x8a   : > { %2726 = vsyncadd (%p2872_p1), [#allocation20], 4294966016  ;;  %v2768_v0 = vmov 0   ;;  %v2354_v1 = vld [vmem:[#allocation13 + $0x74] ss:$8 sps:$4 sm:$0xff]   ;;  %v2769_v19 = vmov 0.0  }
  0x8b   : > { %669 = vmatprep.mubr.bf16.mxu0 %v2768_v0  ;;  %924 = vmatprep.mubr.bf16.mxu1 %v2768_v0  ;;  %v2356_v2 = vld [vmem:[#allocation13 + $0x70] ss:$8 sps:$4 sm:$0xff]   ;;  %v2357_v3 = vld [vmem:[#allocation13 + $0x64] ss:$8 sps:$4 sm:$0xff]   ;;  %v2359_v4 = vld [vmem:[#allocation13 + $0x60] ss:$8 sps:$4 sm:$0xff]  }
  0x8c   : > { %637 = vmatprep.subr.bf16.mxu0 %v2354_v1  ;;  %v2360_v5 = vld [vmem:[#allocation13 + $0x54] ss:$8 sps:$4 sm:$0xff]   ;;  %v2362_v6 = vld [vmem:[#allocation13 + $0x50] ss:$8 sps:$4 sm:$0xff]   ;;  %v2363_v7 = vld [vmem:[#allocation13 + $0x44] ss:$8 sps:$4 sm:$0xff]  }
  0x8d   : > { %638 = vmatpush1.bf16.msra.mxu0 %v2356_v2  ;;  %v2365_v8 = vld [vmem:[#allocation13 + $0x40] ss:$8 sps:$4 sm:$0xff]   ;;  %v2366_v9 = vld [vmem:[#allocation13 + $0x34] ss:$8 sps:$4 sm:$0xff]   ;;  %v2368_v10 = vld [vmem:[#allocation13 + $0x30] ss:$8 sps:$4 sm:$0xff]  }
  0x8e   : > { %639 = vmatprep.subr.bf16.mxu0 %v2357_v3  ;;  %v2369_v11 = vld [vmem:[#allocation13 + $0x24] ss:$8 sps:$4 sm:$0xff]   ;;  %v2371_v12 = vld [vmem:[#allocation13 + $0x20] ss:$8 sps:$4 sm:$0xff]   ;;  %v2372_v13 = vld [vmem:[#allocation13 + $0x14] ss:$8 sps:$4 sm:$0xff]  }
  0x8f   : > { %v2374_v14 = vld [vmem:[#allocation13 + $0x10] ss:$8 sps:$4 sm:$0xff]   ;;  %v2375_v15 = vld [vmem:[#allocation13 + $0x4] ss:$8 sps:$4 sm:$0xff]   ;;  %v2377_v16 = vld [vmem:[#allocation13] ss:$8 sps:$4 sm:$0xff]  }
  0x90   : > { %v539_v17 = vld [vmem:[%s3004_s9] sm:$0xff]  ;;  %680 = vst [vmem:[#allocation2] sm:$0xff] %v2769_v19  ;;  %v2386_v26 = vld [vmem:[#allocation16 + $0x7c] ss:$12 sps:$4 sm:$0xff]   ;;  %vm2770_vm0 = vmmov 0   ;;  %vm1715_vm3 = vcmask 1041409  }
  0x91   : > { %640 = vmatpush1.bf16.msra.mxu0 %v2359_v4  ;;  %v540_v18 = vpack.c.bf16 %v539_v17, %v539_v17  ;;  %v2378_v20 = vld [vmem:[#allocation16 + $0xac] ss:$12 sps:$4 sm:$0xff]   ;;  %v2380_v21 = vld [vmem:[#allocation16 + $0xa8] ss:$12 sps:$4 sm:$0xff]   ;;  %v2381_v22 = vld [vmem:[#allocation16 + $0xb0] ss:$12 sps:$4 sm:$0xff]  }
  0x92   : > { %641 = vmatprep.subr.bf16.mxu0 %v2360_v5  ;;  %892 = vmatprep.subr.bf16.mxu1 %v2378_v20  ;;  %v2382_v23 = vld [vmem:[#allocation16 + $0x94] ss:$12 sps:$4 sm:$0xff]   ;;  %v2384_v24 = vld [vmem:[#allocation16 + $0x90] ss:$12 sps:$4 sm:$0xff]   ;;  %v2385_v25 = vld [vmem:[#allocation16 + $0x98] ss:$12 sps:$4 sm:$0xff]  }
  0x93   : > { %893 = vmatpush1.bf16.msra.mxu1 %v2380_v21  ;;  %v2388_v27 = vld [vmem:[#allocation16 + $0x78] ss:$12 sps:$4 sm:$0xff]   ;;  %v2389_v28 = vld [vmem:[#allocation16 + $0x80] ss:$12 sps:$4 sm:$0xff]   ;;  %v2393_v31 = vld [vmem:[#allocation16 + $0x68] ss:$12 sps:$4 sm:$0xff]  }
  0x94   : > { %894 = vmatprep.subr.bf16.mxu1 %v2382_v23  ;;  %v2390_v29 = vld [vmem:[#allocation16 + $0x64] ss:$12 sps:$4 sm:$0xff]   ;;  %v2392_v30 = vld [vmem:[#allocation16 + $0x60] ss:$12 sps:$4 sm:$0xff]   ;;  %v2396_v33 = vld [vmem:[#allocation16 + $0x48] ss:$12 sps:$4 sm:$0xff]  }
  0x95   : > { %642 = vmatpush1.bf16.msra.mxu0 %v2362_v6  ;;  %v2394_v32 = vld [vmem:[#allocation16 + $0x4c] ss:$12 sps:$4 sm:$0xff]   ;;  %v2397_v34 = vld [vmem:[#allocation16 + $0x50] ss:$12 sps:$4 sm:$0xff]   ;;  %v2398_v35 = vld [vmem:[#allocation16 + $0x34] ss:$12 sps:$4 sm:$0xff]  }
  0x96   : > { %643 = vmatprep.subr.bf16.mxu0 %v2363_v7  ;;  %v2400_v36 = vld [vmem:[#allocation16 + $0x30] ss:$12 sps:$4 sm:$0xff]   ;;  %v2401_v37 = vld [vmem:[#allocation16 + $0x38] ss:$12 sps:$4 sm:$0xff]   ;;  %v2405_v40 = vld [vmem:[#allocation16 + $0x20] ss:$12 sps:$4 sm:$0xff]  }
  0x97   : > { %895 = vmatpush1.bf16.msra.mxu1 %v2384_v24  ;;  %v2402_v38 = vld [vmem:[#allocation16 + $0x1c] ss:$12 sps:$4 sm:$0xff]   ;;  %v2404_v39 = vld [vmem:[#allocation16 + $0x18] ss:$12 sps:$4 sm:$0xff]   ;;  %v2408_v42 = vld [vmem:[#allocation16] ss:$12 sps:$4 sm:$0xff]  }
  0x98   : > { %896 = vmatprep.subr.bf16.mxu1 %v2386_v26  ;;  %v2406_v41 = vld [vmem:[#allocation16 + $0x4] ss:$12 sps:$4 sm:$0xff]   ;;  %v2409_v43 = vld [vmem:[#allocation16 + $0x8] ss:$12 sps:$4 sm:$0xff]   ;;  %v2077_v48 = vld [vmem:[#allocation15] ss:$0 sm:$0xff] }
  0x99   : > { %644 = vmatpush1.bf16.msra.mxu0 %v2365_v8  ;;  %v2078_v49 = vld [vmem:[#allocation15 + $0x1] ss:$0 sm:$0xff]  ;;  %v2079_v50 = vld [vmem:[#allocation15 + $0x2] ss:$0 sm:$0xff]  ;;  %v2080_v56 = vld [vmem:[#allocation15 + $0x3] ss:$0 sm:$0xff] }
  0x9a   : > { %645 = vmatprep.subr.bf16.mxu0 %v2366_v9  ;;  %v2081_v61 = vld [vmem:[%s3263_s3] ss:$0 sm:$0xff]  ;;  %v2411_v7 = vld [vmem:[#allocation18 + $0x30] sm:$0xff]   ;;  %v2412_v8 = vld [vmem:[#allocation18 + $0x28] sm:$0xff]   ;;  %vm1718_vm4 = vcmask 1042434   ;;  %vm1721_vm5 = vcmask 1043459  }
  0x9b   : > { %897 = vmatpush1.bf16.msra.mxu1 %v2388_v27  ;;  %v2410_v5 = vld [vmem:[#allocation18 + $0x38] sm:$0xff]   ;;  %v2413_v9 = vld [vmem:[#allocation18 + $0x20] sm:$0xff]   ;;  %vm1724_vm6 = vcmask 1044484   ;;  %vm1727_vm7 = vcmask 1045509   ;;  %vm1730_vm8 = vcmask 1046534   ;;  %vm1733_vm9 = vcmask 1047559  }
  0x9c   : > { %898 = vmatprep.subr.bf16.mxu1 %v2390_v29  ;;  %s3304_s10 = sld [smem:[#allocation34_spill]]  ;;  %s2131_s18 = sshll.u32 %s2745_s24, 7 }
  0x9d   : > { %646 = vmatpush1.bf16.msra.mxu0 %v2368_v10  ;;  %v2414_v10 = vld [vmem:[#allocation18 + $0x18] sm:$0xff]   ;;  %s3305_s14 = sld [smem:[#allocation35_spill]]  ;;  %s530_s30 = scalar_lea.vmem [#allocation22], %s2053_s7 }
  0x9e   : > { %647 = vmatprep.subr.bf16.mxu0 %v2369_v11  ;;  %v2415_v11 = vld [vmem:[#allocation18 + $0x10] sm:$0xff]   ;;  %s1903_s1 = sshll.u32 %s530_s30, 4  ;;  %s3306_s28 = sld [smem:[#allocation36_spill]]  ;;  %s1904_s1 = int_to_ptr.vmem [resolvable:$true] %s1903_s1 }
  0x9f   : > { %899 = vmatpush1.bf16.msra.mxu1 %v2392_v30  ;;  %s1889_s12 = scalar_lea.sflag [#allocation12], %s2998_s2  ;;  %s2661_s20 = scalar_lea.vmem %s1904_s1, 128 }
  0xa0   : > { %900 = vmatprep.subr.bf16.mxu1 %v2394_v32  ;;  %p2662_p1 = scmp.ne.s32.totalorder %s1904_s1, %s2661_s20  ;;  %s2772_s13 = smov [#allocation22]  }
  0xa1   : > { %648 = vmatpush1.bf16.msra.mxu0 %v2371_v12  ;;  %v2416_v12 = vld [vmem:[#allocation18 + $0x8] sm:$0xff]  }
  0xa2   : > { %649 = vmatprep.subr.bf16.mxu0 %v2372_v13  ;;  %v2417_v13 = vld [vmem:[#allocation18] sm:$0xff]   ;;  %p2663_p3 = pnand %p2662_p1, %p2968_p8 }
  0xa3   : > { %901 = vmatpush1.bf16.msra.mxu1 %v2396_v33 }
  0xa4   : > { %902 = vmatprep.subr.bf16.mxu1 %v2398_v35  ;;  %s1901_s29 = scalar_lea.hbm %s3306_s28, %s2131_s18  ;;  %p2664_p2 = pneg %p2663_p3 }
  0xa5   : > { %650 = vmatpush1.bf16.msra.mxu0 %v2374_v14  ;;  %v1124_v14 = vlaneseq }
  0xa6   : > { %651 = vmatprep.subr.bf16.mxu0 %v2375_v15 }
  0xa7   : > { %903 = vmatpush1.bf16.msra.mxu1 %v2400_v36  ;;  %v3057_v15 = vshrl.u32 %v1124_v14, 7 }
  0xa8   : > { %904 = vmatprep.subr.bf16.mxu1 %v2402_v38 }
  0xa9   : > { %652 = vmatpush1.bf16.msra.mxu0 %v2377_v16  ;;  %v1321_v16 = vsub.s32 1, %v3057_v15  ;;  %v3062_v27 = vsub.s32 0, %v3057_v15  ;;  %v1343_v32 = vsub.s32 3, %v3057_v15  ;;  %v1365_v36 = vsub.s32 5, %v3057_v15 }
  0xaa   : > { %2161 = vmatprep.subr.bf16.mxu0 %v2769_v19  ;;  %v1376_v38 = vsub.s32 6, %v3057_v15 }
  0xab   : > { %905 = vmatpush1.bf16.msra.mxu1 %v2404_v39 }
  0xac   : > { %670 = vmatmul.mubr.bf16.vlgmr.msra.gmra.mxu0 %v540_v18  ;;  %906 = vmatprep.subr.bf16.mxu1 %v2406_v41 }
  0xad   : > { %2162 = vmatpush3.bf16.msra.mxu0 %v2381_v22  ;;  %2177 = vmatprep.mubr.msk.bf16.mxu0 %vm2770_vm0, %v2769_v19  ;;  %v1332_v22 = vsub.s32 2, %v3057_v15 }
  0xae   : > { %2163 = vmatprep.subr.bf16.mxu0 %v2769_v19 }
  0xaf   : > { %907 = vmatpush1.bf16.msra.mxu1 %v2408_v42 }
  0xb0   : > { %2181 = vmatprep.subr.bf16.mxu1 %v2769_v19 }
  0xb1   : > { %2164 = vmatpush3.bf16.msra.mxu0 %v2385_v25 }
  0xb2   : > { %2165 = vmatprep.subr.bf16.mxu0 %v2769_v19 }
  0xb5   : > { %2166 = vmatpush3.bf16.msra.mxu0 %v2389_v28 }
  0xb6   : > { %2167 = vmatprep.subr.bf16.mxu0 %v2769_v19 }
  0xb9   : > { %2168 = vmatpush3.bf16.msra.mxu0 %v2393_v31 }
  0xba   : > { %2169 = vmatprep.subr.bf16.mxu0 %v2769_v19 }
  0xbd   : > { %2170 = vmatpush3.bf16.msra.mxu0 %v2397_v34  ;;  %v1354_v34 = vsub.s32 4, %v3057_v15 }
  0xbe   : > { %2171 = vmatprep.subr.bf16.mxu0 %v2769_v19 }
  0xc1   : > { %2172 = vmatpush3.bf16.msra.mxu0 %v2401_v37 }
  0xc2   : > { %2173 = vmatprep.subr.bf16.mxu0 %v2769_v19 }
  0xc5   : > { %2174 = vmatpush3.bf16.msra.mxu0 %v2405_v40 }
  0xc6   : > { %2175 = vmatprep.subr.bf16.mxu0 %v2769_v19 }
  0xc9   : > { %2176 = vmatpush3.bf16.msra.mxu0 %v2409_v43 }
  0xca   : > { %2201 = vmatprep.subr.bf16.mxu0 %v2769_v19 }
 0x16c   : > { %v671_v44 = vpop.f32.mrf.mxu0 }
 0x16d   : > { %681 = vst [vmem:[#allocation2 + $0x8] sm:$0xff] %v671_v44  ;;  %v713_v60 = vmul.f32 %v2080_v56, %v671_v44  ;;  %v2423_v56 = vld [vmem:[#allocation21 + $0x10] sm:$0xff]  }
 0x16e   : > { %v3036_v45 = vpop.f32.mrf.mxu0 }
 0x170   : > { %v675_v46 = vpop.f32.mrf.mxu0 }
 0x172   : > { %v676_v47 = vpop.f32.mrf.mxu0 }
 0x174   : > { %v684_v51 = vld [vmem:[#allocation2 + $0x5] sm:$0xff] }
 0x175   : > { %v691_v52 = vld [vmem:[#allocation2 + $0x6] sm:$0xff]  ;;  %v690_v54 = vmul.f32 %v2077_v48, %v684_v51  ;;  %v1387_v48 = vsub.s32 7, %v3057_v15 }
 0x176   : > { %v699_v53 = vld [vmem:[#allocation2 + $0x7] sm:$0xff]  ;;  %v697_v55 = vmul.f32 %v2078_v49, %v691_v52 }
 0x177   : > { %v705_v58 = vmul.f32 %v2079_v50, %v699_v53  ;;  %v2418_v51 = vld [vmem:[#allocation21 + $0x38] sm:$0xff]   ;;  %v2419_v52 = vld [vmem:[#allocation21 + $0x30] sm:$0xff]   ;;  %v2420_v53 = vld [vmem:[#allocation21 + $0x28] sm:$0xff]  }
 0x178   : > { %v698_v57 = vadd.f32 %v697_v55, %v690_v54  ;;  %v2421_v54 = vld [vmem:[#allocation21 + $0x20] sm:$0xff]   ;;  %v2422_v55 = vld [vmem:[#allocation21 + $0x18] sm:$0xff]  }
 0x17a   : > { %v706_v59 = vadd.f32 %v705_v58, %v698_v57  ;;  %v2424_v57 = vld [vmem:[#allocation21 + $0x8] sm:$0xff]  }
 0x17b   : > { %v2107_v58 = vld [vmem:[%s3266_s6] ss:$0 sm:$0xff] }
 0x17c   : > { %v714_v62 = vadd.f32 %v713_v60, %v706_v59  ;;  %v2425_v60 = vld [vmem:[#allocation21] sm:$0xff]  }
 0x17e   : > { %v722_v63 = vadd.f32 %v2081_v61, %v714_v62 }
 0x180   : > { %v2082_v0 = vmul.f32 -1.442695, %v722_v63 }
 0x182   : > { %2426 = vpow2.f32 %v2082_v0 }
 0x18f   : > { %v2427_v1 = vpop.eup %2426 }
 0x190   : > { %v726_v2 = vadd.f32 1.0, %v2427_v1 }
 0x192   : > { %2428 = vrcp.f32 %v726_v2 }
 0x19f   : > { %v2429_v3 = vpop.eup %2428 }
 0x1a0   : > { %v3041_v4 = vmul.f32 %v2429_v3, %v722_v63 }
 0x1a2   : > { %v731_v6 = vpack.c.bf16 %v3041_v4, %v3041_v4 }
 0x1a4   : > { %925 = vmatmul.mubr.bf16.vlgmr.msra.gmra.mxu1 %v731_v6  ;;  %2178 = vmatmul.mubr.bf16.vlgmr.msra.gmra.mxu0 %v731_v6 }
 0x1a5   : > { %2182 = vmatpush3.bf16.msra.mxu1 %v2410_v5  ;;  %2197 = vmatprep.mubr.msk.bf16.mxu1 %vm2770_vm0, %v2769_v19 }
 0x1a6   : > { %2183 = vmatprep.subr.bf16.mxu1 %v2769_v19  ;;  %2217 = vmatprep.mubr.msk.bf16.mxu0 %vm2770_vm0, %v2769_v19 }
 0x1a7   : > { %2202 = vmatpush3.bf16.msra.mxu0 %v2418_v51 }
 0x1a8   : > { %2203 = vmatprep.subr.bf16.mxu0 %v2769_v19 }
 0x1a9   : > { %2184 = vmatpush3.bf16.msra.mxu1 %v2411_v7 }
 0x1aa   : > { %2185 = vmatprep.subr.bf16.mxu1 %v2769_v19 }
 0x1ab   : > { %2204 = vmatpush3.bf16.msra.mxu0 %v2419_v52 }
 0x1ac   : > { %2205 = vmatprep.subr.bf16.mxu0 %v2769_v19 }
 0x1ad   : > { %2186 = vmatpush3.bf16.msra.mxu1 %v2412_v8 }
 0x1ae   : > { %2187 = vmatprep.subr.bf16.mxu1 %v2769_v19 }
 0x1af   : > { %2206 = vmatpush3.bf16.msra.mxu0 %v2420_v53 }
 0x1b0   : > { %2207 = vmatprep.subr.bf16.mxu0 %v2769_v19 }
 0x1b1   : > { %2188 = vmatpush3.bf16.msra.mxu1 %v2413_v9 }
 0x1b2   : > { %2189 = vmatprep.subr.bf16.mxu1 %v2769_v19 }
 0x1b3   : > { %2208 = vmatpush3.bf16.msra.mxu0 %v2421_v54 }
 0x1b4   : > { %2209 = vmatprep.subr.bf16.mxu0 %v2769_v19 }
 0x1b5   : > { %2190 = vmatpush3.bf16.msra.mxu1 %v2414_v10 }
 0x1b6   : > { %2191 = vmatprep.subr.bf16.mxu1 %v2769_v19 }
 0x1b7   : > { %2210 = vmatpush3.bf16.msra.mxu0 %v2422_v55 }
 0x1b8   : > { %2211 = vmatprep.subr.bf16.mxu0 %v2769_v19 }
 0x1b9   : > { %2192 = vmatpush3.bf16.msra.mxu1 %v2415_v11 }
 0x1ba   : > { %2193 = vmatprep.subr.bf16.mxu1 %v2769_v19 }
 0x1bb   : > { %2212 = vmatpush3.bf16.msra.mxu0 %v2423_v56 }
 0x1bc   : > { %2213 = vmatprep.subr.bf16.mxu0 %v2769_v19 }
 0x1bd   : > { %2194 = vmatpush3.bf16.msra.mxu1 %v2416_v12 }
 0x1be   : > { %2195 = vmatprep.subr.bf16.mxu1 %v2769_v19 }
 0x1bf   : > { %2214 = vmatpush3.bf16.msra.mxu0 %v2424_v57 }
 0x1c0   : > { %2215 = vmatprep.subr.bf16.mxu0 %v2769_v19 }
 0x1c1   : > { %2196 = vmatpush3.bf16.msra.mxu1 %v2417_v13 }
 0x1c3   : > { %2216 = vmatpush3.bf16.msra.mxu0 %v2425_v60 }
 0x264   : > { %v926_v17 = vpop.f32.mrf.mxu1  ;;  %v967_v18 = vpop.f32.mrf.mxu0 }
 0x265   : > { %v975_v20 = vpack.c.bf16 %v926_v17, %v926_v17  ;;  %v1498_v21 = vrot.slane %v967_v18, %v1321_v16  ;;  %v1509_v28 = vrot.slane %v967_v18, %v1332_v22  ;;  %v1487_v31 = vrot.slane %v967_v18, %v3062_v27 }
 0x266   : > { %v928_v23 = vpop.f32.mrf.mxu1  ;;  %v2179_v24 = vpop.f32.mrf.mxu0  ;;  %v1520_v33 = vrot.slane %v967_v18, %v1343_v32  ;;  %v1531_v35 = vrot.slane %v967_v18, %v1354_v34  ;;  %v1542_v37 = vrot.slane %v967_v18, %v1365_v36  ;;  %v1553_v39 = vrot.slane %v967_v18, %v1376_v38 }
 0x267   : > { %2198 = vmatmul.mubr.bf16.vlgmr.msra.gmra.mxu1 %v975_v20  ;;  %1504 = vbcast.lane.b32.xlu1 %v1498_v21, 264  ;;  %v1311_v40 = vrot.slane %v928_v23, %v3062_v27  ;;  %v1322_v41 = vrot.slane %v928_v23, %v1321_v16  ;;  %v1333_v42 = vrot.slane %v928_v23, %v1332_v22  ;;  %v2771_v17 = vmov 1966171168  }
 0x268   : > { %1500 = vbcast.lane.b32.xlu0 %v1498_v21, 256  ;;  %v930_v25 = vpop.f32.mrf.mxu1  ;;  %v970_v26 = vpop.f32.mrf.mxu0  ;;  %v1344_v43 = vrot.slane %v928_v23, %v1343_v32  ;;  %v1355_v44 = vrot.slane %v928_v23, %v1354_v34  ;;  %v1366_v46 = vrot.slane %v928_v23, %v1365_v36  ;;  %v1377_v47 = vrot.slane %v928_v23, %v1376_v38 }
 0x269   : > { %v1388_v49 = vrot.slane %v928_v23, %v1387_v48  ;;  %v1564_v50 = vrot.slane %v967_v18, %v1387_v48  ;;  %v1122_v18 = vunpack.c.l.s4 %v2771_v17 }
 0x26a   : > { %v931_v29 = vpop.f32.mrf.mxu1  ;;  %v2180_v30 = vpop.f32.mrf.mxu0 }
 0x26b   : > { %1515 = vbcast.lane.b32.xlu1 %v1509_v28, 264  ;;  %v1123_v22 = vunpack.c.0.s8 %v1122_v18 }
 0x26c   : > { %1511 = vbcast.lane.b32.xlu0 %v1509_v28, 256 }
 0x26f   : > { %1493 = vbcast.lane.b32.xlu1 %v1487_v31, 264 }
 0x270   : > { %1489 = vbcast.lane.b32.xlu0 %v1487_v31, 256  ;;  %v3102_v31 = vsub.s32 %v1123_v22, %v3057_v15  ;;  %v3114_v15 = vld [vmem:[#allocation19] sm:$0xff] }
 0x273   : > { %1526 = vbcast.lane.b32.xlu1 %v1520_v33, 264 }
 0x274   : > { %1522 = vbcast.lane.b32.xlu0 %v1520_v33, 256 }
 0x277   : > { %1537 = vbcast.lane.b32.xlu1 %v1531_v35, 264 }
 0x278   : > { %1533 = vbcast.lane.b32.xlu0 %v1531_v35, 256 }
 0x27b   : > { %1548 = vbcast.lane.b32.xlu1 %v1542_v37, 264 }
 0x27c   : > { %1544 = vbcast.lane.b32.xlu0 %v1542_v37, 256  ;;  %v2117_v37 = vmul.f32 -1.442695, %v3036_v45 }
 0x27f   : > { %1559 = vbcast.lane.b32.xlu1 %v1553_v39, 264 }
 0x280   : > { %1313 = vbcast.lane.b32.xlu0 %v1311_v40, 256 }
 0x283   : > { %1324 = vbcast.lane.b32.xlu1 %v1322_v41, 256 }
 0x284   : > { %1317 = vbcast.lane.b32.xlu0 %v1311_v40, 264 }
 0x287   : > { %1328 = vbcast.lane.b32.xlu1 %v1322_v41, 264 }
 0x288   : > { %1555 = vbcast.lane.b32.xlu0 %v1553_v39, 256 }
 0x28b   : > { %1339 = vbcast.lane.b32.xlu1 %v1333_v42, 264 }
 0x28c   : > { %1335 = vbcast.lane.b32.xlu0 %v1333_v42, 256 }
 0x28f   : > { %1350 = vbcast.lane.b32.xlu1 %v1344_v43, 264 }
 0x290   : > { %1346 = vbcast.lane.b32.xlu0 %v1344_v43, 256 }
 0x293   : > { %1361 = vbcast.lane.b32.xlu1 %v1355_v44, 264 }
 0x294   : > { %1357 = vbcast.lane.b32.xlu0 %v1355_v44, 256 }
 0x297   : > { %1372 = vbcast.lane.b32.xlu1 %v1366_v46, 264 }
 0x298   : > { %1368 = vbcast.lane.b32.xlu0 %v1366_v46, 256  ;;  %v3119_v46 = vld [vmem:[#allocation19 + $0x8] sm:$0xff] }
 0x29b   : > { %1383 = vbcast.lane.b32.xlu1 %v1377_v47, 264 }
 0x29c   : > { %1379 = vbcast.lane.b32.xlu0 %v1377_v47, 256 }
 0x29f   : > { %1394 = vbcast.lane.b32.xlu1 %v1388_v49, 264 }
 0x2a0   : > { %1390 = vbcast.lane.b32.xlu0 %v1388_v49, 256 }
 0x2a3   : > { %1570 = vbcast.lane.b32.xlu1 %v1564_v50, 264 }
 0x2a4   : > { %1566 = vbcast.lane.b32.xlu0 %v1564_v50, 256 }
 0x2d9   : > { %v3083_v6 = vpop.permute.xlu1 %1504 }
 0x2da   : > { %v3081_v5 = vpop.permute.xlu0 %1500 }
 0x2dd   : > { %v3087_v8 = vpop.permute.xlu1 %1515 }
 0x2de   : > { %v3085_v7 = vpop.permute.xlu0 %1511 }
 0x2e1   : > { %v3091_v11 = vpop.permute.xlu1 %1493 }
 0x2e2   : > { %v3089_v19 = vpop.permute.xlu0 %1489 }
 0x2e5   : > { %v3095_v16 = vpop.permute.xlu1 %1526 }
 0x2e6   : > { %v3093_v13 = vpop.permute.xlu0 %1522 }
 0x2e9   : > { %v3099_v25 = vpop.permute.xlu1 %1537 }
 0x2ea   : > { %v3097_v24 = vpop.permute.xlu0 %1533 }
 0x2ed   : > { %v3106_v35 = vpop.permute.xlu1 %1548 }
 0x2ee   : > { %v3104_v33 = vpop.permute.xlu0 %1544 }
 0x2f1   : > { %v3117_v44 = vpop.permute.xlu1 %1559 }
 0x2f2   : > { %v3112_v41 = vpop.permute.xlu0 %1313 }
 0x2f5   : > { %v3128_v57 = vpop.permute.xlu1 %1324 }
 0x2f6   : > { %v1318_v55 = vpop.permute.xlu0 %1317 }
 0x2f9   : > { %v1329_v18 = vpop.permute.xlu1 %1328 }
 0x327   : > { %v1081_v59 = vpop.f32.mrf.mxu1 }
 0x328   : > { %v1082_v61 = vadd.f32 %v2107_v58, %v1081_v59 }
 0x329   : > { %v2199_v62 = vpop.f32.mrf.mxu1 }
 0x32a   : > { %v1090_v63 = vand.u32 2147483647, %v1082_v61  ;;  %v1087_v29 = vmax.f32 %v1082_v61, 0.0  ;;  %vm1088_vm2 = vcmp.ne.f32.partialorder %v1082_v61, %v1082_v61 }
 0x32b   : > { %v1084_v0 = vpop.f32.mrf.mxu1 }
 0x32c   : > { %v1091_v1 = vsub.f32 0.0, %v1090_v63 }
 0x32d   : > { %v2200_v2 = vpop.f32.mrf.mxu1 }
 0x32e   : > { %v1092_v3 = vmul.f32 1.442695, %v1091_v1 }
 0x330   : > { %2430 = vpow2.f32 %v1092_v3 }
 0x33d   : > { %v2431_v9 = vpop.eup %2430 }
 0x33e   : > { %v1094_v10 = vadd.f32 1.0, %v2431_v9  ;;  %v1097_v12 = vmul.f32 -0.5, %v2431_v9  ;;  %v1100_v21 = vand.u32 2147483647, %v2431_v9 }
 0x340   : > { %2432 = vlog2.f32 %v1094_v10  ;;  %v1098_v20 = vadd.f32 1.0, %v1097_v12  ;;  %vm1101_vm1 = vcmp.lt.f32.partialorder %v1100_v21, 0.0004427343  ;;  %v3136_v10 = vpop.permute.xlu0 %1555 }
 0x341   : > { %2434 = vpow2.f32 %v2117_v37 }
 0x342   : > { %v1099_v28 = vmul.f32 %v2431_v9, %v1098_v20 }
 0x34d   : > { %v2433_v23 = vpop.eup %2432 }
 0x34e   : > { %v1096_v26 = vmul.f32 0.6931472, %v2433_v23  ;;  %v2435_v17 = vpop.eup %2434 }
 0x350   : > { %v1102_v30 = vsel %vm1101_vm1, %v1099_v28, %v1096_v26 }
 0x351   : > { %v1103_v32 = vadd.f32 %v1102_v30, %v1087_v29  ;;  %v1678_v30 = vadd.f32 1.0, %v2435_v17 }
 0x353   : > { %v1104_v34 = vsel %vm1088_vm2, %v1082_v61, %v1103_v32 }
 0x354   : > { %v1127_v36 = vrot.slane %v1104_v34, %v3102_v31  ;;  %v1120_v42 = vcombine.high %v1104_v34, %v1104_v34  ;;  %v1257_v59 = vmul.f32 %v1104_v34, %v3041_v4 }
 0x356   : > { %v1135_v38 = vcombine.high %v1127_v36, %v1127_v36  ;;  %v1143_v39 = vrot.slane %v1127_v36, %v3102_v31  ;;  %v1134_v50 = vrot.slane %v1120_v42, %v3102_v31  ;;  %v1266_v9 = vrot.slane %v1257_v59, %v3102_v31 }
 0x358   : > { %v1157_v40 = vrot.slane %v1135_v38, %v3102_v31  ;;  %v1172_v43 = vrot.slane %v1143_v39, %v3062_v27  ;;  %v1165_v47 = vcombine.high %v1143_v39, %v1143_v39  ;;  %v1136_v60 = vcombine.high %v1134_v50, %v1134_v50  ;;  %v1336_v38 = vpop.permute.xlu0 %1335 }
 0x359   : > { %v1150_v61 = vrot.slane %v1134_v50, %v3102_v31  ;;  %v1274_v28 = vcombine.high %v1266_v9, %v1266_v9  ;;  %v1282_v29 = vrot.slane %v1266_v9, %v3102_v31  ;;  %v1259_v50 = vcombine.high %v1257_v59, %v1257_v59 }
 0x35a   : > { %v1176_v48 = vrot.slane %v1157_v40, %v3062_v27  ;;  %v1209_v49 = vmul.f32 %v1172_v43, %v3114_v15  ;;  %v1210_v51 = vmul.f32 %v1172_v43, %v3119_v46  ;;  %v1167_v52 = vcombine.high %v1157_v40, %v1157_v40  ;;  %v1340_v43 = vpop.permute.xlu1 %1339 }
 0x35b   : > { %v1180_v53 = vrot.slane %v1165_v47, %v3062_v27  ;;  %v1164_v12 = vrot.slane %v1136_v60, %v3102_v31  ;;  %v1188_v20 = vrot.slane %v1150_v61, %v3062_v27  ;;  %v1166_v32 = vcombine.high %v1150_v61, %v1150_v61 }
 0x35c   : > { %v1211_v54 = vmul.f32 %v1176_v48, %v3114_v15  ;;  %v1212_v56 = vmul.f32 %v1176_v48, %v3119_v46  ;;  %v1225_v58 = vmul.f32 1.442695, %v1209_v49  ;;  %v1227_v62 = vmul.f32 1.442695, %v1210_v51 }
 0x35d   : > { %v1184_v63 = vrot.slane %v1167_v52, %v3062_v27  ;;  %v1213_v0 = vmul.f32 %v1180_v53, %v3114_v15  ;;  %v1214_v2 = vmul.f32 %v1180_v53, %v3119_v46  ;;  %v1192_v34 = vrot.slane %v1164_v12, %v3062_v27 }
 0x35e   : > { %2436 = vpow2.f32 %v1225_v58  ;;  %v1229_v1 = vmul.f32 1.442695, %v1211_v54  ;;  %v1231_v3 = vmul.f32 1.442695, %v1212_v56  ;;  %v1217_v36 = vmul.f32 %v1188_v20, %v3114_v15 }
 0x35f   : > { %2438 = vpow2.f32 %v1227_v62  ;;  %v1215_v21 = vmul.f32 %v1184_v63, %v3114_v15  ;;  %v1233_v22 = vmul.f32 1.442695, %v1213_v0  ;;  %v1216_v23 = vmul.f32 %v1184_v63, %v3119_v46 }
 0x360   : > { %2440 = vpow2.f32 %v1229_v1  ;;  %v1235_v26 = vmul.f32 1.442695, %v1214_v2  ;;  %v1168_v39 = vcombine.high %v1164_v12, %v1164_v12  ;;  %v1218_v40 = vmul.f32 %v1188_v20, %v3119_v46  ;;  %v1347_v1 = vpop.permute.xlu0 %1346  ;;  %v1351_v12 = vpop.permute.xlu1 %1350 }
 0x361   : > { %2442 = vpow2.f32 %v1231_v3  ;;  %v1237_v37 = vmul.f32 1.442695, %v1215_v21  ;;  %v1239_v42 = vmul.f32 1.442695, %v1216_v23  ;;  %v1296_v47 = vrot.slane %v1274_v28, %v3102_v31 }
 0x362   : > { %2444 = vpow2.f32 %v1233_v22  ;;  %v1399_v48 = vrot.slane %v1282_v29, %v3062_v27  ;;  %v1196_v49 = vrot.slane %v1166_v32, %v3062_v27  ;;  %v1219_v51 = vmul.f32 %v1192_v34, %v3114_v15 }
 0x363   : > { %2446 = vpow2.f32 %v1235_v26  ;;  %v1241_v52 = vmul.f32 1.442695, %v1217_v36  ;;  %v1200_v54 = vrot.slane %v1168_v39, %v3062_v27  ;;  %v1220_v56 = vmul.f32 %v1192_v34, %v3119_v46 }
 0x364   : > { %2448 = vrcp.f32 %v1678_v30  ;;  %v1243_v58 = vmul.f32 1.442695, %v1218_v40  ;;  %v1304_v61 = vcombine.high %v1282_v29, %v1282_v29  ;;  %v1403_v62 = vrot.slane %v1296_v47, %v3062_v27 }
 0x365   : > { %2450 = vpow2.f32 %v1237_v37  ;;  %v1436_v63 = vmul.f32 %v1399_v48, %v3112_v41  ;;  %v1221_v59 = vmul.f32 %v1196_v49, %v3114_v15  ;;  %v1273_v2 = vrot.slane %v1259_v50, %v3102_v31 }
 0x366   : > { %2452 = vpow2.f32 %v1239_v42  ;;  %v1437_v3 = vmul.f32 %v1399_v48, %v1318_v55  ;;  %v1222_v17 = vmul.f32 %v1196_v49, %v3119_v46  ;;  %v1245_v20 = vmul.f32 1.442695, %v1219_v51  ;;  %v1358_v49 = vpop.permute.xlu0 %1357 }
 0x367   : > { %2454 = vpow2.f32 %v1241_v52  ;;  %v1223_v23 = vmul.f32 %v1200_v54, %v3114_v15  ;;  %v1247_v26 = vmul.f32 1.442695, %v1220_v56  ;;  %v1306_v29 = vcombine.high %v1296_v47, %v1296_v47 }
 0x368   : > { %2456 = vpow2.f32 %v1243_v58  ;;  %v1407_v30 = vrot.slane %v1304_v61, %v3062_v27  ;;  %v1438_v32 = vmul.f32 %v1403_v62, %v3128_v57  ;;  %v1224_v34 = vmul.f32 %v1200_v54, %v3119_v46 }
 0x369   : > { %v1275_v36 = vcombine.high %v1273_v2, %v1273_v2  ;;  %v1439_v37 = vmul.f32 %v1403_v62, %v1329_v18  ;;  %2458 = vpow2.f32 %v1245_v20  ;;  %v1249_v40 = vmul.f32 1.442695, %v1221_v59 }
 0x36a   : > { %v1251_v42 = vmul.f32 1.442695, %v1222_v17  ;;  %2460 = vpow2.f32 %v1247_v26  ;;  %v1253_v50 = vmul.f32 1.442695, %v1223_v23  ;;  %v1289_v47 = vrot.slane %v1273_v2, %v3102_v31 }
 0x36b   : > { %v2437_v53 = vpop.eup %2436  ;;  %v1411_v57 = vrot.slane %v1306_v29, %v3062_v27  ;;  %v1440_v56 = vmul.f32 %v1407_v30, %v1336_v38  ;;  %v1255_v54 = vmul.f32 1.442695, %v1224_v34  ;;  %v1441_v58 = vmul.f32 %v1407_v30, %v1340_v43 }
 0x36c   : > { %v2439_v60 = vpop.eup %2438  ;;  %v1452_v0 = vmul.f32 0.0, %v2437_v53  ;;  %v1362_v53 = vpop.permute.xlu1 %1361  ;;  %2462 = vpow2.f32 %v1249_v40  ;;  %v1303_v38 = vrot.slane %v1275_v36, %v3102_v31  ;;  %v1415_v43 = vrot.slane %v1289_v47, %v3062_v27 }
 0x36d   : > { %v1453_v9 = vmul.f32 0.0, %v2439_v60  ;;  %v2441_v22 = vpop.eup %2440  ;;  %2464 = vpow2.f32 %v1251_v42  ;;  %v1442_v17 = vmul.f32 %v1411_v57, %v1347_v1  ;;  %v1443_v23 = vmul.f32 %v1411_v57, %v1351_v12 }
 0x36e   : > { %v1454_v21 = vadd.f32 %v1452_v0, %v1436_v63  ;;  %v2443_v28 = vpop.eup %2442  ;;  %2466 = vpow2.f32 %v1253_v50  ;;  %v1419_v30 = vrot.slane %v1303_v38, %v3062_v27  ;;  %v1444_v34 = vmul.f32 %v1415_v43, %v1358_v49 }
 0x36f   : > { %v1455_v41 = vadd.f32 %v1453_v9, %v1437_v3  ;;  %v2445_v15 = vpop.eup %2444  ;;  %2468 = vpow2.f32 %v1255_v54  ;;  %v1307_v40 = vcombine.high %v1303_v38, %v1303_v38 }
 0x370   : > { %v1456_v55 = vmul.f32 %v2441_v22, %v1454_v21  ;;  %v2447_v52 = vpop.eup %2446  ;;  %v1572_v0 = vmul.f32 %v3089_v19, %v1454_v21  ;;  %v1369_v22 = vpop.permute.xlu0 %1368 }
 0x371   : > { %v1457_v39 = vmul.f32 %v2443_v28, %v1455_v41  ;;  %v3165_v62 = vpop.eup %2448  ;;  %v1573_v59 = vmul.f32 %v3091_v11, %v1455_v41  ;;  %v1373_v11 = vpop.permute.xlu1 %1372  ;;  %v1305_v41 = vcombine.high %v1289_v47, %v1289_v47 }
 0x372   : > { %v1458_v48 = vadd.f32 %v1456_v55, %v1438_v32  ;;  %v2451_v2 = vpop.eup %2450 }
 0x373   : > { %v1459_v51 = vadd.f32 %v1457_v39, %v1439_v37  ;;  %v1588_v31 = vadd.f32 %v1573_v59, %v1572_v0  ;;  %v1445_v37 = vmul.f32 %v1415_v43, %v1362_v53 }
 0x374   : > { %v1460_v46 = vmul.f32 %v2445_v15, %v1458_v48  ;;  %v1574_v18 = vmul.f32 %v3081_v5, %v1458_v48  ;;  %v2453_v5 = vpop.eup %2452  ;;  %v1380_v47 = vpop.permute.xlu0 %1379 }
 0x375   : > { %v1461_v60 = vmul.f32 %v2447_v52, %v1459_v51  ;;  %v1575_v61 = vmul.f32 %v3083_v6, %v1459_v51  ;;  %v2455_v29 = vpop.eup %2454  ;;  %v1589_v48 = vrot.slane %v1588_v31, 4  ;;  %v1423_v51 = vrot.slane %v1305_v41, %v3062_v27 }
 0x376   : > { %v1462_v63 = vadd.f32 %v1460_v46, %v1440_v56  ;;  %v2457_v55 = vpop.eup %2456  ;;  %v1446_v52 = vmul.f32 %v1419_v30, %v1369_v22  ;;  %v1384_v46 = vpop.permute.xlu1 %1383 }
 0x377   : > { %v1463_v3 = vadd.f32 %v1461_v60, %v1441_v58  ;;  %v1595_v9 = vadd.f32 %v1575_v61, %v1574_v18  ;;  %v2459_v50 = vpop.eup %2458  ;;  %v1447_v58 = vmul.f32 %v1419_v30, %v1373_v11  ;;  %v1590_v59 = vadd.f32 %v1589_v48, %v1588_v31 }
 0x378   : > { %v1464_v20 = vmul.f32 %v2451_v2, %v1462_v63  ;;  %v1576_v6 = vmul.f32 %v3085_v7, %v1462_v63  ;;  %v2461_v49 = vpop.eup %2460  ;;  %v1427_v63 = vrot.slane %v1307_v40, %v3062_v27 }
 0x379   : > { %v1465_v26 = vmul.f32 %v2453_v5, %v1463_v3  ;;  %v1577_v19 = vmul.f32 %v3087_v8, %v1463_v3  ;;  %v1596_v21 = vrot.slane %v1595_v9, 4  ;;  %v2463_v38 = vpop.eup %2462  ;;  %v2116_v3 = vld [vmem:[%s3268_s8] ss:$0 sm:$0xff]  ;;  %v1591_v31 = vrot.slane %v1590_v59, 2 }
 0x37a   : > { %v1466_v28 = vadd.f32 %v1464_v20, %v1442_v17  ;;  %v2465_v17 = vpop.eup %2464  ;;  %v1449_v20 = vmul.f32 %v1423_v51, %v1384_v46  ;;  %v3186_v11 = vmul.f32 %v2116_v3, %v3041_v4  ;;  %v1395_v41 = vpop.permute.xlu1 %1394 }
 0x37b   : > { %v1467_v32 = vadd.f32 %v1465_v26, %v1443_v23  ;;  %v1602_v1 = vadd.f32 %v1577_v19, %v1576_v6  ;;  %v1597_v36 = vadd.f32 %v1596_v21, %v1595_v9  ;;  %v1448_v9 = vmul.f32 %v1423_v51, %v1380_v47  ;;  %v1391_v23 = vpop.permute.xlu0 %1390  ;;  %v2467_v30 = vpop.eup %2466 }
 0x37c   : > { %v1468_v7 = vmul.f32 %v2455_v29, %v1466_v28  ;;  %v1578_v12 = vmul.f32 %v3093_v13, %v1466_v28  ;;  %v1592_v40 = vadd.f32 %v1591_v31, %v1590_v59 }
 0x37d   : > { %v1469_v8 = vmul.f32 %v2457_v55, %v1467_v32  ;;  %v1579_v39 = vmul.f32 %v3095_v16, %v1467_v32  ;;  %v1603_v15 = vrot.slane %v1602_v1, 4  ;;  %v1598_v53 = vrot.slane %v1597_v36, 2 }
 0x37e   : > { %v1470_v42 = vadd.f32 %v1468_v7, %v1444_v34  ;;  %v1450_v7 = vmul.f32 %v1427_v63, %v1391_v23 }
 0x37f   : > { %v1471_v57 = vadd.f32 %v1469_v8, %v1445_v37  ;;  %v1609_v56 = vadd.f32 %v1579_v39, %v1578_v12  ;;  %v1604_v54 = vadd.f32 %v1603_v15, %v1602_v1  ;;  %v1599_v22 = vadd.f32 %v1598_v53, %v1597_v36 }
 0x380   : > { %v1472_v18 = vmul.f32 %v2459_v50, %v1470_v42  ;;  %v1580_v13 = vmul.f32 %v3097_v24, %v1470_v42  ;;  %v1451_v12 = vmul.f32 %v1427_v63, %v1395_v41  ;;  %v1567_v50 = vpop.permute.xlu0 %1566 }
 0x381   : > { %v1473_v16 = vmul.f32 %v2461_v49, %v1471_v57  ;;  %v1581_v60 = vmul.f32 %v3099_v25, %v1471_v57  ;;  %v1610_v61 = vrot.slane %v1609_v56, 4  ;;  %v1605_v2 = vrot.slane %v1604_v54, 2  ;;  %v1571_v49 = vpop.permute.xlu1 %1570 }
 0x382   : > { %v1474_v0 = vadd.f32 %v1472_v18, %v1446_v52  ;;  %v1600_v4 = vrot.slane %v1599_v22, 1 }
 0x383   : > { %v1475_v5 = vadd.f32 %v1473_v16, %v1447_v58  ;;  %v1616_v24 = vadd.f32 %v1581_v60, %v1580_v13  ;;  %v1611_v43 = vadd.f32 %v1610_v61, %v1609_v56  ;;  %v1606_v29 = vadd.f32 %v1605_v2, %v1604_v54 }
 0x384   : > { %v1476_v6 = vmul.f32 %v2463_v38, %v1474_v0  ;;  %v1582_v25 = vmul.f32 %v3104_v33, %v1474_v0  ;;  %v2469_v33 = vpop.eup %2468  ;;  %v3192_v56 = vmul.f32 %v3165_v62, %v3036_v45  ;;  %v1652_v16 = vrot.slane %v3186_v11, 1 }
 0x385   : > { %v1477_v27 = vmul.f32 %v2465_v17, %v1475_v5  ;;  %v1583_v26 = vmul.f32 %v3106_v35, %v1475_v5  ;;  %v1617_v19 = vrot.slane %v1616_v24, 4  ;;  %v1612_v21 = vrot.slane %v1611_v43, 2 }
 0x386   : > { %v1478_v28 = vadd.f32 %v1476_v6, %v1448_v9  ;;  %v1607_v48 = vrot.slane %v1606_v29, 1  ;;  %v1593_v60 = vrot.slane %v1592_v40, 1  ;;  %v1653_v45 = vrot.slane %v3186_v11, 2 }
 0x387   : > { %v1479_v32 = vadd.f32 %v1477_v27, %v1449_v20  ;;  %v1613_v1 = vadd.f32 %v1612_v21, %v1611_v43  ;;  %v1618_v55 = vadd.f32 %v1617_v19, %v1616_v24  ;;  %v1623_v34 = vadd.f32 %v1583_v26, %v1582_v25 }
 0x388   : > { %v1480_v36 = vmul.f32 %v2467_v30, %v1478_v28  ;;  %v1584_v35 = vmul.f32 %v3136_v10, %v1478_v28  ;;  %v1608_v54 = vadd.f32 %v1607_v48, %v1606_v29  ;;  %v1683_v62 = vrot.slane %v3192_v56, 1 }
 0x389   : > { %v1481_v37 = vmul.f32 %v2469_v33, %v1479_v32  ;;  %v1585_v8 = vmul.f32 %v3117_v44, %v1479_v32  ;;  %v1619_v39 = vrot.slane %v1618_v55, 2  ;;  %v1624_v15 = vrot.slane %v1623_v34, 4 }
 0x38a   : > { %v1482_v42 = vadd.f32 %v1480_v36, %v1450_v7  ;;  %v1614_v51 = vrot.slane %v1613_v1, 1  ;;  %v1601_v44 = vadd.f32 %v1600_v4, %v1599_v22  ;;  %v1654_v9 = vrot.slane %v3186_v11, 3 }
 0x38b   : > { %v1483_v47 = vadd.f32 %v1481_v37, %v1451_v12  ;;  %v1620_v52 = vadd.f32 %v1619_v39, %v1618_v55  ;;  %v1630_v57 = vadd.f32 %v1585_v8, %v1584_v35  ;;  %v1625_v46 = vadd.f32 %v1624_v15, %v1623_v34 }
 0x38c   : > { %v1586_v10 = vmul.f32 %v1567_v50, %v1482_v42  ;;  %v1615_v61 = vadd.f32 %v1614_v51, %v1613_v1  ;;  %v1668_v5 = vadd.f32 %v1652_v16, %v1601_v44  ;;  %v1655_v43 = vrot.slane %v3186_v11, 4 }
 0x38d   : > { %v1587_v18 = vmul.f32 %v1571_v49, %v1483_v47  ;;  %v1621_v13 = vrot.slane %v1620_v52, 1  ;;  %v1631_v53 = vrot.slane %v1630_v57, 4  ;;  %v1626_v58 = vrot.slane %v1625_v46, 2 }
 0x38e   : > { %v1669_v17 = vadd.f32 %v1653_v45, %v1608_v54  ;;  %v1684_v20 = vrot.slane %v3192_v56, 2  ;;  %v1594_v6 = vadd.f32 %v1593_v60, %v1592_v40  ;;  %v1670_v23 = vadd.f32 %v1654_v9, %v1615_v61 }
 0x38f   : > { %v1632_v63 = vadd.f32 %v1631_v53, %v1630_v57  ;;  %v1637_v0 = vadd.f32 %v1587_v18, %v1586_v10  ;;  %v1622_v59 = vadd.f32 %v1621_v13, %v1620_v52  ;;  %v1627_v2 = vadd.f32 %v1626_v58, %v1625_v46 }
 0x390   : > { %v1656_v26 = vrot.slane %v3186_v11, 5  ;;  %v1685_v21 = vrot.slane %v3192_v56, 3  ;;  %v1686_v31 = vrot.slane %v3192_v56, 4  ;;  %v1699_v29 = vmul.f32 %v1683_v62, %v1668_v5  ;;  %v2476_v62 = vld [vmem:[#allocation2] sm:$0xff] }
 0x391   : > { %v1633_v38 = vrot.slane %v1632_v63, 2  ;;  %v1638_v3 = vrot.slane %v1637_v0, 4  ;;  %v1628_v24 = vrot.slane %v1627_v2, 1  ;;  %v1671_v19 = vadd.f32 %v1655_v43, %v1622_v59 }
 0x392   : > { %v1657_v30 = vrot.slane %v3186_v11, 6  ;;  %v1687_v1 = vrot.slane %v3192_v56, 5  ;;  %v1700_v55 = vmul.f32 %v1684_v20, %v1669_v17  ;;  %v1667_v7 = vadd.f32 %v3186_v11, %v1594_v6 }
 0x393   : > { %v1634_v25 = vadd.f32 %v1633_v38, %v1632_v63  ;;  %v1639_v22 = vadd.f32 %v1638_v3, %v1637_v0  ;;  %v1629_v27 = vadd.f32 %v1628_v24, %v1627_v2  ;;  %v1701_v12 = vmul.f32 %v1685_v21, %v1670_v23 }
 0x394   : > { %v1688_v36 = vrot.slane %v3192_v56, 6  ;;  %v1702_v35 = vmul.f32 %v1686_v31, %v1671_v19  ;;  %v1714_v39 = vrot.slane %v1699_v29, 7  ;;  %v1658_v40 = vrot.slane %v3186_v11, 7 }
 0x395   : > { %v1635_v41 = vrot.slane %v1634_v25, 1  ;;  %v1640_v28 = vrot.slane %v1639_v22, 2  ;;  %v1672_v32 = vadd.f32 %v1656_v26, %v1629_v27  ;;  %v1717_v42 = vrot.slane %v1700_v55, 6 }
 0x396   : > { %v1698_v15 = vmul.f32 %v3192_v56, %v1667_v7  ;;  %v1720_v47 = vrot.slane %v1701_v12, 5  ;;  %v1689_v51 = vrot.slane %v3192_v56, 7  ;;  %v1723_v52 = vrot.slane %v1702_v35, 4 }
 0x397   : > { %v1636_v34 = vadd.f32 %v1635_v41, %v1634_v25  ;;  %v1641_v33 = vadd.f32 %v1640_v28, %v1639_v22  ;;  %v1703_v4 = vmul.f32 %v1687_v1, %v1672_v32  ;;  %v1846_v59 = vand.u32 127, %v1124_v14  ;;  %v2127_v14 = vld [vmem:[%s3304_s10] ss:$0 sm:$0xff]  ;;  %v1878_v41 = vld [vmem:[%s3004_s9] sm:$0xff]  ;;  %s2665_s9 = sshll.u32 %s2772_s13, 4  ;;  %s2666_s9 = int_to_ptr.vmem [resolvable:$false] %s2665_s9 }
 0x398   : > { %v1716_v49 = vsel %vm1715_vm3, %v1714_v39, %v1698_v15  ;;  %v2128_v25 = vld [vmem:[%s3305_s14] ss:$0 sm:$0xff]  ;;  %s2667_s24 = scalar_lea.vmem %s2666_s9, 256  ;;  %p2668_p10 = scmp.lt.s32.totalorder %s1904_s1, %s2666_s9 }
 0x399   : > { %v1642_v37 = vrot.slane %v1641_v33, 1  ;;  %v1673_v8 = vadd.f32 %v1657_v30, %v1636_v34  ;;  %v1726_v10 = vrot.slane %v1703_v4, 3  ;;  %v1719_v46 = vsel %vm1718_vm4, %v1717_v42, %v1716_v49  ;;  %p2669_p11 = scmp.lt.s32.totalorder %s2667_s24, %s2661_s20 }
 0x39a   : > { %v1722_v44 = vsel %vm1721_vm5, %v1720_v47, %v1719_v46  ;;  %vm1847_vm10 = vcmp.lt.s32.totalorder %v1846_v59, 32 }
 0x39b   : > { %v1643_v48 = vadd.f32 %v1642_v37, %v1641_v33  ;;  %v1704_v50 = vmul.f32 %v1688_v36, %v1673_v8  ;;  %v1725_v13 = vsel %vm1724_vm6, %v1723_v52, %v1722_v44  ;;  %v2126_v38 = vsel %vm1847_vm10, 1.0, %v2476_v62  ;;  %p2670_p7 = por %p2669_p11, %p2668_p10 }
 0x39c   : > { %v1728_v53 = vsel %vm1727_vm7, %v1726_v10, %v1725_v13 }
 0x39d   : > { %v1674_v57 = vadd.f32 %v1658_v40, %v1643_v48  ;;  %v1729_v18 = vrot.slane %v1704_v50, 2  ;;  %p2671_p12 = pnand %p2670_p7, %p2664_p2 }
 0x39f   : > { %v1705_v11 = vmul.f32 %v1689_v51, %v1674_v57  ;;  %v1731_v58 = vsel %vm1730_vm8, %v1729_v18, %v1728_v53 }
 0x3a1   : > { %v1732_v54 = vrot.slane %v1705_v11, 1 }
 0x3a3   : > { %v1734_v16 = vsel %vm1733_vm9, %v1732_v54, %v1731_v58 }
 0x3a4   : > { %v1740_v60 = vpack.c.bf16 %v1734_v16, %v1734_v16 }
 0x3a6   : > { %2218 = vmatmul.mubr.bf16.vlgmr.msra.gmra.mxu0 %v1740_v60 }
 0x466   : > { %v1839_v56 = vpop.f32.mrf.mxu0 }
 0x467   : > { %1850 = vadd.xlane.f32.xlu0 %v1839_v56 }
 0x468   : > { %v2219_v61 = vpop.f32.mrf.mxu0 }
 0x46a   : > { %v1842_v63 = vpop.f32.mrf.mxu0 }
 0x46c   : > { %v2220_v0 = vpop.f32.mrf.mxu0 }
 0x4f0   : > { %v1851_v2 = vpop.xlane.xlu0 %1850 }
 0x4f1   : > { %v1852_v45 = vmul.f32 0.03125, %v1851_v2 }
 0x4f3   : > { %v1853_v3 = vsub.f32 %v1839_v56, %v1852_v45 }
 0x4f5   : > { %v1854_v9 = vmul.f32 %v2126_v38, %v1853_v3 }
 0x4f7   : > { %v1855_v5 = vmul.f32 %v1854_v9, %v1854_v9 }
 0x4f9   : > { %1856 = vadd.xlane.f32.xlu1 %v1855_v5 }
 0x582   : > { %v1857_v24 = vpop.xlane.xlu1 %1856 }
 0x583   : > { %v1858_v43 = vmul.f32 0.03125, %v1857_v24 }
 0x585   : > { %v1859_v17 = vadd.f32 1e-05, %v1858_v43 }
 0x587   : > { %2470 = vrsqrt.f32 %v1859_v17 }
 0x594   : > { %v2471_v20 = vpop.eup %2470 }
 0x595   : > { %v1861_v6 = vmul.f32 %v2471_v20, %v1854_v9 }
 0x597   : > { %v1869_v22 = vmul.f32 %v2127_v14, %v1861_v6 }
 0x599   : > { %v1877_v23 = vadd.f32 %v2128_v25, %v1869_v22 }
 0x59b   : > { %v2129_v27 = vmul.f32 -1.442695, %v1877_v23 }
 0x59d   : > { %2472 = vpow2.f32 %v2129_v27 }
 0x5aa   : > { %v2473_v26 = vpop.eup %2472 }
 0x5ab   : > { %v1882_v19 = vadd.f32 1.0, %v2473_v26 }
 0x5ad   : > { %2474 = vrcp.f32 %v1882_v19 }
 0x5ba   : > { %v2475_v21 = vpop.eup %2474 }
 0x5bb   : > { %v1885_v28 = vmul.f32 %v2475_v21, %v1877_v23 }
 0x5bd   : > { %v1886_v31 = vadd.f32 %v1885_v28, %v1878_v41 }
 0x5bf   : > { %1887 = vst [vmem:[%s530_s30] sm:$0xff] %v1886_v31 }
 0x5c0   : > { %2674 = shalt.err (!%p2671_p12)
}
 0x5c1   : > { %s2675_s7 = scalar_lea.hbm %s1901_s29, 128  ;;  %s2679_s11 = scalar_lea.hbm %s3306_s28, 256 }
 0x5c2   : > { %p2676_p5 = scmp.ne.s32.totalorder %s1901_s29, %s2675_s7  ;;  %p2680_p4 = scmp.lt.s32.totalorder %s1901_s29, %s3306_s28 }
 0x5c3   : > { %p2681_p9 = scmp.lt.s32.totalorder %s2679_s11, %s2675_s7 }
 0x5c4   : > { %p2677_p0 = pnand %p2676_p5, %p2968_p8 }
 0x5c5   : > { %p2682_p13 = por %p2681_p9, %p2680_p4 }
 0x5c6   : > { %p2678_p6 = pneg %p2677_p0 }
 0x5c8   : > { %p2683_p1 = pnand %p2682_p13, %p2678_p6 }
 0x5ca   : > { %2686 = shalt.err (!%p2683_p1)
}
 0x5cb   : > { %2247 = dma.vmem_to_hbm [thread:$0]  (%p2968_p8), %s1904_s1, 128, %s1901_s29, %s1889_s12  }
 0x5cc PF: > { %s1915_s18 = sand.u32 1, %s2733_s21   ;;  %p3307_p3 = scmp.ne.s32.totalorder %s3302_s16, 0 }
 0x5cd   : > { %p3308_p2 = scmp.ge.s32.totalorder %s2753_s26, 2  ;;  %s1916_s30 = scalar_lea.sflag [#allocation12], %s1915_s18 }
 0x5cf   : > { %p2273_p10 = pnand %p3308_p2, %p3307_p3 }
 0x5d1   : > { %p2274_p11 = pneg %p2273_p10 }
 0x5d3   : > { %2728 = dma.done.wait (%p2274_p11), %s1916_s30, 128  }
 0x5d4   : > { %2730 = vsyncadd (%p2274_p11), %s1916_s30, 4294967168  ;;  %s31_s26 = sadd.s32 1, %s2753_s26   ;;  %s3309_s21 = smov %s2737_s22 }
 0x5d5   : > { %p28_p7 = scmp.ge.s32.totalorder %s31_s26, 4   ;;  %s3310_s22 = smov %s2741_s23 }
 0x5d6   : > { %s3311_s23 = smov %s2973_s27  ;;  %s3312_s24 = smov %s2749_s25 }
 0x5d7   : > { %s3313_s25 = smov %s3315_s15  ;;  %30 = sbr.rel (!%p28_p7) target bundleno = 19 (0x13), region = 142 }
 0x5dc   :  { %1921 = vsyncpa [#allocation11], 1 }
 0x5dd   :  { %1923 = vsyncpa [#allocation11 + $0x1], 1 }
 0x5de   :  { %1924 = vsyncpa [#allocation14], 1 }
 0x5df   :  { %1925 = vsyncpa [#allocation17], 1 }
 0x5e0   :  { %1926 = vsyncpa [#allocation20], 1 }
 0x5e1   :  { %1927 = vsyncpa [#allocation12], 1 }
 0x5e2   :  { %1929 = vsyncpa [#allocation12 + $0x1], 1 }

</bundles_post_ra>
